<compile_context>
chip_gen: v7x
topology: tpu7x:2x2x1
jax: 0.10.0
libtpu: 0.0.40
codegen_flags: <defaults>
</compile_context>

<pallas_src>
import jax
import jax.numpy as jnp
from jax.experimental import pallas as pl
from jax.experimental.pallas import tpu as pltpu


_C2, _C5 = 128, 512          # v2 / output channel widths
_ROW_BLOCK = 256             # pixels (rows) per grid step


def _round_up(n: int, m: int) -> int:
    return ((n + m - 1) // m) * m


# ----------------------------- fused kernel -------------------------------- #

def _fused_kernel(x_ref, ma_ref, mb_ref, mc_ref,
                  w12_ref, b12_ref, b2_ref,
                  w45_ref, b5_ref, d45_ref, o_ref):
    """One row-block of the fused forward.

    x_ref  : (TR,1)  input pixel values on the (H+8,W+8) canvas (0 outside x)
    ma_ref : (TR,1)  1 inside conv1's (H+2,W+2) region           (else 0)
    mb_ref : (TR,1)  1 on conv2's outermost padding ring         (else 0)
    mc_ref : (TR,1)  1 inside conv4's (H+6,W+6) region           (else 0)
    w12/b12/b2 : (1,128)   fused conv1∘conv2 weight / biases
    w45        : (128,512) bf16 fused conv4∘conv5 weight
    b5 / d45   : (1,512)   conv5 bias / (b4@w5 + b5 - b5)
    """
    # v2 on the canvas: interior = x*w12 + b12, conv2 ring = b2, outside = 0.
    v2 = (x_ref[...] * w12_ref[...]
          + ma_ref[...] * b12_ref[...]
          + mb_ref[...] * b2_ref[...])                      # (TR,128) f32, VPU

    # channel max of v2 (zero outside v2's region, matching zero-padding).
    v6 = jnp.max(v2, axis=1, keepdims=True)                  # (TR,1) f32, XLU

    # fused conv4∘conv5: single MXU matmul, bf16 operands, f32 accumulation.
    v5 = jnp.dot(v2.astype(jnp.bfloat16), w45_ref[...],
                 preferred_element_type=jnp.float32)         # (TR,512), MXU

    # bias select (b45 inside conv4's region, b5 on the outermost ring) + max.
    o_ref[...] = v5 + b5_ref[...] + mc_ref[...] * d45_ref[...] + v6


# ----------------------------- model --------------------------------------- #

def init_params(key):
    keys = jax.random.split(key, 10)

    def conv_p(kw, kb, cin, cout):
        w = jax.random.normal(kw, (cin, cout), jnp.float32) * 0.05
        b = jax.random.normal(kb, (cout,), jnp.float32) * 0.05
        return w, b

    return {
        "conv1": conv_p(keys[0], keys[1], 1, 64),
        "conv2": conv_p(keys[2], keys[3], 64, 128),
        "conv3": conv_p(keys[4], keys[5], 128, 128),  # dead in the graph (v3 unused)
        "conv4": conv_p(keys[6], keys[7], 128, 256),
        "conv5": conv_p(keys[8], keys[9], 256, 512),
    }


@jax.jit
def model_forward(params, x_nchw):
    """x_nchw: (1, 1, H, W) float32 -> (1, 512, H+8, W+8) float32."""
    _, _, H, W = x_nchw.shape
    H4, W4 = H + 8, W + 8                      # conv5 (output) grid
    P4 = H4 * W4
    P4a = _round_up(P4, _ROW_BLOCK)
    n_blocks = P4a // _ROW_BLOCK

    # --- parameter prep (tiny, f32 pre-products; fused by XLA under jit) ----
    w1, b1 = params["conv1"]                   # (1,64),   (64,)
    w2, b2 = params["conv2"]                   # (64,128), (128,)
    w4, b4 = params["conv4"]                   # (128,256),(256,)
    w5, b5 = params["conv5"]                   # (256,512),(512,)

    w12 = (w1 @ w2).reshape(1, _C2)                         # conv1∘conv2 weight
    b12 = (b1 @ w2 + b2).reshape(1, _C2)                    # conv1∘conv2 bias
    b2r = b2.reshape(1, _C2)
    w45 = (w4 @ w5).astype(jnp.bfloat16)                    # conv4∘conv5 weight
    b45 = b4 @ w5 + b5
    b5r = b5.reshape(1, _C5)
    d45 = (b45 - b5).reshape(1, _C5)

    # --- canvas input + padding-ring masks, flattened to (P4a,1) columns ----
    xpad = jnp.pad(x_nchw[0, 0], ((4, 4), (4, 4)))          # (H4, W4)
    ii = jnp.arange(H4)[:, None]
    jj = jnp.arange(W4)[None, :]

    def region(off):  # 1 inside the centered (H4-2*off, W4-2*off) region
        return (ii >= off) & (ii < H4 - off) & (jj >= off) & (jj < W4 - off)

    r1, r2, r3 = region(3), region(2), region(1)            # conv1/conv2/conv4 grids
    mA, mB, mC = r1, r2 & (~r1), r3

    def col(a):
        c = a.astype(jnp.float32).reshape(P4, 1)
        return jnp.pad(c, ((0, P4a - P4), (0, 0)))

    xcol, mAc, mBc, mCc = col(xpad), col(mA), col(mB), col(mC)

    col_spec = pl.BlockSpec((_ROW_BLOCK, 1), lambda i: (i, 0))
    row128 = pl.BlockSpec((1, _C2), lambda i: (0, 0))
    row512 = pl.BlockSpec((1, _C5), lambda i: (0, 0))
    w_spec = pl.BlockSpec((_C2, _C5), lambda i: (0, 0))

    # TODO(synk): the original torch forward is not runnable as written:
    # torch.max(v2, 1) returns a (values, indices) namedtuple, and its spatial
    # size (H+4) cannot broadcast against v5's (H+8).  We approximate the
    # intent: take the channel-max *values* of v2 and zero-pad them spatially
    # (center-aligned, +2 per side) onto v5's grid before the add.
    out_flat = pl.pallas_call(
        _fused_kernel,
        out_shape=jax.ShapeDtypeStruct((P4a, _C5), jnp.float32),
        grid=(n_blocks,),
        in_specs=[col_spec, col_spec, col_spec, col_spec,
                  row128, row128, row128,
                  w_spec, row512, row512],
        out_specs=pl.BlockSpec((_ROW_BLOCK, _C5), lambda i: (i, 0)),
        compiler_params=pltpu.CompilerParams(
            dimension_semantics=("parallel",)),
    )(xcol, mAc, mBc, mCc, w12, b12, b2r, w45, b5r, d45)

    out = out_flat[:P4].reshape(H4, W4, _C5)
    # TODO(synk): if the consumer accepts NHWC, drop this transpose — it is a
    # separate HBM relayout outside the pipelined kernel.
    return jnp.transpose(out, (2, 0, 1))[None]              # (1,512,H+8,W+8)


# ----------------------------- pure-JAX reference --------------------------- #

def ref_forward(params, x_nchw):
    """Unfused f32 reference with the same chosen v6 semantics."""
    def conv(v, wb):                      # v: (H,W,Cin) channels-last, pad=1
        w, b = wb
        vp = jnp.pad(v, ((1, 1), (1, 1), (0, 0)))
        return vp @ w + b

    v0 = x_nchw[0, 0][..., None]
    v1 = conv(v0, params["conv1"])
    v2 = conv(v1, params["conv2"])
    v4 = conv(v2, params["conv4"])
    v5 = conv(v4, params["conv5"])
    v6 = jnp.pad(jnp.max(v2, axis=-1), ((2, 2), (2, 2)))[..., None]
    out = v5 + v6
    return jnp.transpose(out, (2, 0, 1))[None]


# ----------------------------- main ----------------------------------------- #

if __name__ == "__main__":
    key = jax.random.PRNGKey(0)
    pkey, xkey = jax.random.split(key)
    params = init_params(pkey)

    # small spatial size (module uses 64x64; channel widths are fixed by the convs)
    x = jax.random.normal(xkey, (1, 1, 16, 16), jnp.float32)

    out = jax.block_until_ready(model_forward(params, x))
    assert out.shape == (1, 512, 24, 24), out.shape
    assert bool(jnp.all(jnp.isfinite(out)))

    ref = jax.block_until_ready(ref_forward(params, x))
    max_err = float(jnp.max(jnp.abs(out - ref)))
    assert max_err < 2e-2, max_err   # bf16 MXU operands, f32 accumulation

    print("KERNEL_OK")
</pallas_src>

<mosaic_0001>
module attributes {stable_mosaic.version = 11 : i64} {
  func.func @_fused_kernel(%arg0: i32, %arg1: memref<256x1xf32, #tpu.memory_space<vmem>>, %arg2: memref<256x1xf32, #tpu.memory_space<vmem>>, %arg3: memref<256x1xf32, #tpu.memory_space<vmem>>, %arg4: memref<256x1xf32, #tpu.memory_space<vmem>>, %arg5: memref<1x128xf32, #tpu.memory_space<vmem>>, %arg6: memref<1x128xf32, #tpu.memory_space<vmem>>, %arg7: memref<1x128xf32, #tpu.memory_space<vmem>>, %arg8: memref<128x512xbf16, #tpu.memory_space<vmem>>, %arg9: memref<1x512xf32, #tpu.memory_space<vmem>>, %arg10: memref<1x512xf32, #tpu.memory_space<vmem>>, %arg11: memref<256x512xf32, #tpu.memory_space<vmem>>) attributes {dimension_semantics = [#tpu.dimension_semantics<parallel>], iteration_bounds = array<i64: 3>, scalar_prefetch = 0 : i64, scratch_operands = 0 : i64, tpu.core_type = #tpu.core_type<tc>, window_params = [{transform_indices = @transform_0, window_bounds = array<i64: 256, 1>}, {transform_indices = @transform_1, window_bounds = array<i64: 256, 1>}, {transform_indices = @transform_2, window_bounds = array<i64: 256, 1>}, {transform_indices = @transform_3, window_bounds = array<i64: 256, 1>}, {pipeline_mode = #tpu.pipeline_mode<synchronous>, transform_indices = @transform_4, window_bounds = array<i64: 1, 128>}, {pipeline_mode = #tpu.pipeline_mode<synchronous>, transform_indices = @transform_5, window_bounds = array<i64: 1, 128>}, {pipeline_mode = #tpu.pipeline_mode<synchronous>, transform_indices = @transform_6, window_bounds = array<i64: 1, 128>}, {pipeline_mode = #tpu.pipeline_mode<synchronous>, transform_indices = @transform_7, window_bounds = array<i64: 128, 512>}, {pipeline_mode = #tpu.pipeline_mode<synchronous>, transform_indices = @transform_8, window_bounds = array<i64: 1, 512>}, {pipeline_mode = #tpu.pipeline_mode<synchronous>, transform_indices = @transform_9, window_bounds = array<i64: 1, 512>}, {transform_indices = @transform_10, window_bounds = array<i64: 256, 512>}]} {
    %c0 = arith.constant 0 : index
    %c0_0 = arith.constant 0 : index
    %0 = vector.load %arg1[%c0, %c0_0] : memref<256x1xf32, #tpu.memory_space<vmem>>, vector<256x1xf32>
    %c0_1 = arith.constant 0 : index
    %c0_2 = arith.constant 0 : index
    %1 = vector.load %arg5[%c0_1, %c0_2] : memref<1x128xf32, #tpu.memory_space<vmem>>, vector<1x128xf32>
    %2 = vector.broadcast %0 : vector<256x1xf32> to vector<256x128xf32>
    %3 = vector.broadcast %1 : vector<1x128xf32> to vector<256x128xf32>
    %4 = arith.mulf %2, %3 : vector<256x128xf32>
    %c0_3 = arith.constant 0 : index
    %c0_4 = arith.constant 0 : index
    %5 = vector.load %arg2[%c0_3, %c0_4] : memref<256x1xf32, #tpu.memory_space<vmem>>, vector<256x1xf32>
    %c0_5 = arith.constant 0 : index
    %c0_6 = arith.constant 0 : index
    %6 = vector.load %arg6[%c0_5, %c0_6] : memref<1x128xf32, #tpu.memory_space<vmem>>, vector<1x128xf32>
    %7 = vector.broadcast %5 : vector<256x1xf32> to vector<256x128xf32>
    %8 = vector.broadcast %6 : vector<1x128xf32> to vector<256x128xf32>
    %9 = arith.mulf %7, %8 : vector<256x128xf32>
    %10 = arith.addf %4, %9 : vector<256x128xf32>
    %c0_7 = arith.constant 0 : index
    %c0_8 = arith.constant 0 : index
    %11 = vector.load %arg3[%c0_7, %c0_8] : memref<256x1xf32, #tpu.memory_space<vmem>>, vector<256x1xf32>
    %c0_9 = arith.constant 0 : index
    %c0_10 = arith.constant 0 : index
    %12 = vector.load %arg7[%c0_9, %c0_10] : memref<1x128xf32, #tpu.memory_space<vmem>>, vector<1x128xf32>
    %13 = vector.broadcast %11 : vector<256x1xf32> to vector<256x128xf32>
    %14 = vector.broadcast %12 : vector<1x128xf32> to vector<256x128xf32>
    %15 = arith.mulf %13, %14 : vector<256x128xf32>
    %16 = arith.addf %10, %15 : vector<256x128xf32>
    %cst = arith.constant dense<0xFF800000> : vector<256xf32>
    %17 = vector.multi_reduction <maximumf>, %16, %cst [1] : vector<256x128xf32> to vector<256xf32>
    %18 = vector.shape_cast %17 : vector<256xf32> to vector<256x1xf32>
    %19 = arith.truncf %16 : vector<256x128xf32> to vector<256x128xbf16>
    %c0_11 = arith.constant 0 : index
    %c0_12 = arith.constant 0 : index
    %20 = vector.load %arg8[%c0_11, %c0_12] : memref<128x512xbf16, #tpu.memory_space<vmem>>, vector<128x512xbf16>
    %cst_13 = arith.constant dense<0.000000e+00> : vector<256x512xf32>
    %21 = tpu.matmul %19, %20, %cst_13 {dimension_numbers = #tpu.dot_dimension_numbers<[1], [0], [0], [1], [0, 0, 1, 1], [], []>} : vector<256x128xbf16>, vector<128x512xbf16>, vector<256x512xf32> -> vector<256x512xf32>
    %c0_14 = arith.constant 0 : index
    %c0_15 = arith.constant 0 : index
    %22 = vector.load %arg9[%c0_14, %c0_15] : memref<1x512xf32, #tpu.memory_space<vmem>>, vector<1x512xf32>
    %23 = vector.broadcast %22 : vector<1x512xf32> to vector<256x512xf32>
    %24 = arith.addf %21, %23 : vector<256x512xf32>
    %c0_16 = arith.constant 0 : index
    %c0_17 = arith.constant 0 : index
    %25 = vector.load %arg4[%c0_16, %c0_17] : memref<256x1xf32, #tpu.memory_space<vmem>>, vector<256x1xf32>
    %c0_18 = arith.constant 0 : index
    %c0_19 = arith.constant 0 : index
    %26 = vector.load %arg10[%c0_18, %c0_19] : memref<1x512xf32, #tpu.memory_space<vmem>>, vector<1x512xf32>
    %27 = vector.broadcast %25 : vector<256x1xf32> to vector<256x512xf32>
    %28 = vector.broadcast %26 : vector<1x512xf32> to vector<256x512xf32>
    %29 = arith.mulf %27, %28 : vector<256x512xf32>
    %30 = arith.addf %24, %29 : vector<256x512xf32>
    %31 = vector.broadcast %18 : vector<256x1xf32> to vector<256x512xf32>
    %32 = arith.addf %30, %31 : vector<256x512xf32>
    %c0_20 = arith.constant 0 : index
    %c0_21 = arith.constant 0 : index
    %33 = vector.load %arg11[%c0_20, %c0_21] : memref<256x512xf32, #tpu.memory_space<vmem>>, vector<256x512xf32>
    tpu.vector_store %arg11[%c0_20, %c0_21], %32 {strides = array<i32>} : memref<256x512xf32, #tpu.memory_space<vmem>>, vector<256x512xf32>,
    return
  }
  func.func @transform_0(%arg0: i32) -> (i32, i32) {
    %c0_i32 = arith.constant 0 : i32
    %c0_i32_0 = arith.constant 0 : i32
    return %arg0, %c0_i32 : i32, i32
  }
  func.func @transform_1(%arg0: i32) -> (i32, i32) {
    %c0_i32 = arith.constant 0 : i32
    %c0_i32_0 = arith.constant 0 : i32
    return %arg0, %c0_i32 : i32, i32
  }
  func.func @transform_2(%arg0: i32) -> (i32, i32) {
    %c0_i32 = arith.constant 0 : i32
    %c0_i32_0 = arith.constant 0 : i32
    return %arg0, %c0_i32 : i32, i32
  }
  func.func @transform_3(%arg0: i32) -> (i32, i32) {
    %c0_i32 = arith.constant 0 : i32
    %c0_i32_0 = arith.constant 0 : i32
    return %arg0, %c0_i32 : i32, i32
  }
  func.func @transform_4(%arg0: i32) -> (i32, i32) {
    %c0_i32 = arith.constant 0 : i32
    %c0_i32_0 = arith.constant 0 : i32
    %c0_i32_1 = arith.constant 0 : i32
    return %c0_i32, %c0_i32_0 : i32, i32
  }
  func.func @transform_5(%arg0: i32) -> (i32, i32) {
    %c0_i32 = arith.constant 0 : i32
    %c0_i32_0 = arith.constant 0 : i32
    %c0_i32_1 = arith.constant 0 : i32
    return %c0_i32, %c0_i32_0 : i32, i32
  }
  func.func @transform_6(%arg0: i32) -> (i32, i32) {
    %c0_i32 = arith.constant 0 : i32
    %c0_i32_0 = arith.constant 0 : i32
    %c0_i32_1 = arith.constant 0 : i32
    return %c0_i32, %c0_i32_0 : i32, i32
  }
  func.func @transform_7(%arg0: i32) -> (i32, i32) {
    %c0_i32 = arith.constant 0 : i32
    %c0_i32_0 = arith.constant 0 : i32
    %c0_i32_1 = arith.constant 0 : i32
    return %c0_i32, %c0_i32_0 : i32, i32
  }
  func.func @transform_8(%arg0: i32) -> (i32, i32) {
    %c0_i32 = arith.constant 0 : i32
    %c0_i32_0 = arith.constant 0 : i32
    %c0_i32_1 = arith.constant 0 : i32
    return %c0_i32, %c0_i32_0 : i32, i32
  }
  func.func @transform_9(%arg0: i32) -> (i32, i32) {
    %c0_i32 = arith.constant 0 : i32
    %c0_i32_0 = arith.constant 0 : i32
    %c0_i32_1 = arith.constant 0 : i32
    return %c0_i32, %c0_i32_0 : i32, i32
  }
  func.func @transform_10(%arg0: i32) -> (i32, i32) {
    %c0_i32 = arith.constant 0 : i32
    %c0_i32_0 = arith.constant 0 : i32
    return %arg0, %c0_i32 : i32, i32
  }
}

</mosaic_0001>

<bundles_post_ra>
// kernel: model_forward.1
= control target key start
LH: loop header
LB: loop body
LE: loop exit
PB: predicated region body
PF: predicated region fallthrough
CT: control target
= control target key end

     0   :  { %s2866_s13 = smov 0   ;;  %s4607_s0 = inlined_call_operand.vmem [shape: f32[768,1], index: 0, kind: input, shape index: {}]   ;;  %s4608_s1 = inlined_call_operand.vmem [shape: f32[768,1], index: 1, kind: input, shape index: {}]   ;;  %s4609_s2 = inlined_call_operand.vmem [shape: f32[768,1], index: 2, kind: input, shape index: {}]   ;;  %s4610_s3 = inlined_call_operand.vmem [shape: f32[768,1], index: 3, kind: input, shape index: {}]   ;;  %s4611_s4 = inlined_call_operand.vmem [shape: f32[1,128], index: 4, kind: input, shape index: {}]   ;;  %s4612_s5 = inlined_call_operand.vmem [shape: f32[1,128], index: 5, kind: input, shape index: {}]   ;;  %s4613_s6 = inlined_call_operand.vmem [shape: f32[1,128], index: 6, kind: input, shape index: {}]   ;;  %s4614_s7 = inlined_call_operand.vmem [shape: bf16[128,512], index: 7, kind: input, shape index: {}]   ;;  %s4615_s8 = inlined_call_operand.vmem [shape: f32[1,512], index: 8, kind: input, shape index: {}]   ;;  %s4616_s9 = inlined_call_operand.vmem [shape: f32[1,512], index: 9, kind: input, shape index: {}]   ;;  %s4617_s10 = inlined_call_operand.vmem [shape: f32[768,512], index: 10, kind: output, shape index: {}]  }
   0x1 LB: > { %s2689_s14 = sadd.s32 4294967295, %s2808_s13   ;;  %p2693_p0 = scmp.ge.s32.totalorder %s2808_s13, 1  ;;  %s2808_s13 = sphi %s2866_s13, %s20_s13  }
   0x2   : > { %p346_p1 = scmp.lt.s32.totalorder %s2808_s13, 4 }
   0x4   : > { %p347_p2 = pnand %p2693_p0, %p346_p1 }
   0x6   : > { %350 = sbr.rel (%p347_p2) target bundleno = 622 (0x26e), region = 60 }
   0xd   : > { %s2694_s15 = sshll.u32 %s2689_s14, 5  ;;  %v4618_v0 = vmov 0   ;;  %v2754_v40 = vld [vmem:[%s4614_s7 + $0x4] ss:$16 sps:$4 sm:$0xff]   ;;  %v2756_v41 = vld [vmem:[%s4614_s7 + $0xc] ss:$16 sps:$4 sm:$0xff]  }
   0xe   : > { %2753 = vset.pattern.permute.xlu1 %v4618_v0  ;;  %2752 = vset.pattern.permute.xlu0 %v4618_v0  ;;  %p401_p3 = scmp.lt.s32.totalorder %s2694_s15, 95  ;;  %v2758_v43 = vld [vmem:[%s4614_s7] ss:$16 sps:$4 sm:$0xff]   ;;  %v2759_v44 = vld [vmem:[%s4614_s7 + $0x8] ss:$16 sps:$4 sm:$0xff]  }
   0xf   : > { %1515 = vmatprep.mubr.bf16.mxu0 %v4618_v0  ;;  %1708 = vmatprep.mubr.bf16.mxu1 %v4618_v0  ;;  %v2760_v46 = vld [vmem:[%s4614_s7 + $0x24] ss:$16 sps:$4 sm:$0xff]   ;;  %v2762_v47 = vld [vmem:[%s4614_s7 + $0x2c] ss:$16 sps:$4 sm:$0xff]   ;;  %v2764_v49 = vld [vmem:[%s4614_s7 + $0x20] ss:$16 sps:$4 sm:$0xff]  }
  0x10   : > { %s4690_s15 = smov (!%p401_p3, %s2694_s15), 95  ;;  %1483 = vmatprep.subr.bf16.mxu0 %v2754_v40  ;;  %1676 = vmatprep.subr.bf16.mxu1 %v2756_v41  ;;  %v2765_v50 = vld [vmem:[%s4614_s7 + $0x28] ss:$16 sps:$4 sm:$0xff]   ;;  %v2766_v52 = vld [vmem:[%s4614_s7 + $0x44] ss:$16 sps:$4 sm:$0xff]  }
  0x11   : > { %s2881_s16 = sshll.u32 %s4690_s15, 3  ;;  %1484 = vmatpush1.bf16.msra.mxu0 %v2758_v43  ;;  %1677 = vmatpush1.bf16.msra.mxu1 %v2759_v44  ;;  %v2768_v53 = vld [vmem:[%s4614_s7 + $0x4c] ss:$16 sps:$4 sm:$0xff]   ;;  %v2770_v55 = vld [vmem:[%s4614_s7 + $0x40] ss:$16 sps:$4 sm:$0xff]   ;;  %s2742_s21 = sshll.u32 %s4690_s15, 5 }
  0x12   : > { %s2887_s19 = scalar_lea.vmem %s4607_s0, %s2881_s16  ;;  %s2925_s22 = scalar_lea.vmem %s4608_s1, %s2881_s16  ;;  %1485 = vmatprep.subr.bf16.mxu0 %v2760_v46  ;;  %1678 = vmatprep.subr.bf16.mxu1 %v2762_v47  ;;  %v2771_v56 = vld [vmem:[%s4614_s7 + $0x48] ss:$16 sps:$4 sm:$0xff]   ;;  %v2772_v58 = vld [vmem:[%s4614_s7 + $0x64] ss:$16 sps:$4 sm:$0xff]   ;;  %v2774_v59 = vld [vmem:[%s4614_s7 + $0x6c] ss:$16 sps:$4 sm:$0xff]  }
  0x13   : > { %v434_v1 = vld [vmem:[%s2887_s19 + $0x10] sm:$0xff]  ;;  %v432_v2 = vld [vmem:[%s2887_s19] sm:$0xff]  ;;  %v435_v3 = vld [vmem:[%s2887_s19 + $0x18] sm:$0xff]  ;;  %s3001_s29 = scalar_lea.vmem %s4609_s2, %s2881_s16  ;;  %s3434_s17 = scalar_lea.vmem %s4610_s3, %s2881_s16 }
  0x14   : > { %477 = vperm.xlu1 %2753, %v434_v1   ;;  %467 = vperm.xlu0 %2752, %v432_v2   ;;  %v433_v4 = vld [vmem:[%s2887_s19 + $0x8] sm:$0xff]  ;;  %v436_v6 = vld [vmem:[%s2887_s19 + $0x20] sm:$0xff]  ;;  %v439_v7 = vld [vmem:[%s2887_s19 + $0x38] sm:$0xff]  ;;  %s3616_s24 = scalar_lea.vmem %s4617_s10, %s2742_s21 }
  0x15   : > { %v437_v5 = vld [vmem:[%s2887_s19 + $0x28] sm:$0xff]  ;;  %v438_v8 = vld [vmem:[%s2887_s19 + $0x30] sm:$0xff]  ;;  %v440_v10 = vld [vmem:[%s2887_s19 + $0x40] sm:$0xff]  ;;  %1486 = vmatpush1.bf16.msra.mxu0 %v2764_v49  ;;  %1679 = vmatpush1.bf16.msra.mxu1 %v2765_v50 }
  0x16   : > { %v441_v9 = vld [vmem:[%s2887_s19 + $0x48] sm:$0xff]  ;;  %v443_v11 = vld [vmem:[%s2887_s19 + $0x58] sm:$0xff]  ;;  %v442_v12 = vld [vmem:[%s2887_s19 + $0x50] sm:$0xff]  ;;  %1487 = vmatprep.subr.bf16.mxu0 %v2766_v52  ;;  %1680 = vmatprep.subr.bf16.mxu1 %v2768_v53 }
  0x17   : > { %v445_v13 = vld [vmem:[%s2887_s19 + $0x68] sm:$0xff]  ;;  %v444_v14 = vld [vmem:[%s2887_s19 + $0x60] sm:$0xff]  ;;  %v447_v15 = vld [vmem:[%s2887_s19 + $0x78] sm:$0xff] }
  0x18   : > { %482 = vperm.xlu1 %2753, %v435_v3   ;;  %472 = vperm.xlu0 %2752, %v433_v4   ;;  %v446_v16 = vld [vmem:[%s2887_s19 + $0x70] sm:$0xff]  ;;  %v449_v17 = vld [vmem:[%s2887_s19 + $0x88] sm:$0xff]  ;;  %v448_v18 = vld [vmem:[%s2887_s19 + $0x80] sm:$0xff] }
  0x19   : > { %v451_v19 = vld [vmem:[%s2887_s19 + $0x98] sm:$0xff]  ;;  %v450_v20 = vld [vmem:[%s2887_s19 + $0x90] sm:$0xff]  ;;  %v453_v21 = vld [vmem:[%s2887_s19 + $0xa8] sm:$0xff]  ;;  %1488 = vmatpush1.bf16.msra.mxu0 %v2770_v55  ;;  %1681 = vmatpush1.bf16.msra.mxu1 %v2771_v56 }
  0x1a   : > { %v452_v22 = vld [vmem:[%s2887_s19 + $0xa0] sm:$0xff]  ;;  %v455_v23 = vld [vmem:[%s2887_s19 + $0xb8] sm:$0xff]  ;;  %v454_v24 = vld [vmem:[%s2887_s19 + $0xb0] sm:$0xff]  ;;  %1489 = vmatprep.subr.bf16.mxu0 %v2772_v58  ;;  %1682 = vmatprep.subr.bf16.mxu1 %v2774_v59 }
  0x1b   : > { %v457_v25 = vld [vmem:[%s2887_s19 + $0xc8] sm:$0xff]  ;;  %v456_v26 = vld [vmem:[%s2887_s19 + $0xc0] sm:$0xff]  ;;  %v459_v27 = vld [vmem:[%s2887_s19 + $0xd8] sm:$0xff] }
  0x1c   : > { %492 = vperm.xlu1 %2753, %v437_v5   ;;  %487 = vperm.xlu0 %2752, %v436_v6   ;;  %v458_v28 = vld [vmem:[%s2887_s19 + $0xd0] sm:$0xff]  ;;  %v461_v29 = vld [vmem:[%s2887_s19 + $0xe8] sm:$0xff]  ;;  %v460_v30 = vld [vmem:[%s2887_s19 + $0xe0] sm:$0xff] }
  0x1d   : > { %v463_v31 = vld [vmem:[%s2887_s19 + $0xf8] sm:$0xff]  ;;  %v462_v32 = vld [vmem:[%s2887_s19 + $0xf0] sm:$0xff]  ;;  %v664_v33 = vld [vmem:[%s2925_s22 + $0x8] sm:$0xff] }
  0x1e   : > { %v663_v34 = vld [vmem:[%s2925_s22] sm:$0xff]  ;;  %v666_v35 = vld [vmem:[%s2925_s22 + $0x18] sm:$0xff]  ;;  %v665_v36 = vld [vmem:[%s2925_s22 + $0x10] sm:$0xff] }
  0x1f   : > { %v668_v37 = vld [vmem:[%s2925_s22 + $0x28] sm:$0xff]  ;;  %v667_v38 = vld [vmem:[%s2925_s22 + $0x20] sm:$0xff]  ;;  %v670_v39 = vld [vmem:[%s2925_s22 + $0x38] sm:$0xff] }
  0x20   : > { %502 = vperm.xlu1 %2753, %v439_v7   ;;  %497 = vperm.xlu0 %2752, %v438_v8   ;;  %v669_v42 = vld [vmem:[%s2925_s22 + $0x30] sm:$0xff]  ;;  %v672_v45 = vld [vmem:[%s2925_s22 + $0x48] sm:$0xff]  ;;  %v671_v48 = vld [vmem:[%s2925_s22 + $0x40] sm:$0xff] }
  0x21   : > { %v674_v51 = vld [vmem:[%s2925_s22 + $0x58] sm:$0xff]  ;;  %v673_v54 = vld [vmem:[%s2925_s22 + $0x50] sm:$0xff]  ;;  %v676_v57 = vld [vmem:[%s2925_s22 + $0x68] sm:$0xff] }
  0x22   : > { %v675_v60 = vld [vmem:[%s2925_s22 + $0x60] sm:$0xff]  ;;  %v2777_v62 = vld [vmem:[%s4614_s7 + $0x68] ss:$16 sps:$4 sm:$0xff]   ;;  %v2780_v2 = vld [vmem:[%s4614_s7 + $0x8c] ss:$16 sps:$4 sm:$0xff]  }
  0x23   : > { %v2776_v61 = vld [vmem:[%s4614_s7 + $0x60] ss:$16 sps:$4 sm:$0xff]   ;;  %1683 = vmatpush1.bf16.msra.mxu1 %v2777_v62  ;;  %v678_v63 = vld [vmem:[%s2925_s22 + $0x78] sm:$0xff]  ;;  %v2778_v1 = vld [vmem:[%s4614_s7 + $0x84] ss:$16 sps:$4 sm:$0xff]  }
  0x24   : > { %512 = vperm.xlu1 %2753, %v441_v9   ;;  %507 = vperm.xlu0 %2752, %v440_v10   ;;  %v677_v3 = vld [vmem:[%s2925_s22 + $0x70] sm:$0xff]  ;;  %v2783_v5 = vld [vmem:[%s4614_s7 + $0x88] ss:$16 sps:$4 sm:$0xff]   ;;  %v926_v6 = vld [vmem:[%s3001_s29] sm:$0xff] }
  0x25   : > { %1490 = vmatpush1.bf16.msra.mxu0 %v2776_v61  ;;  %v2782_v4 = vld [vmem:[%s4614_s7 + $0x80] ss:$16 sps:$4 sm:$0xff]   ;;  %1684 = vmatprep.subr.bf16.mxu1 %v2780_v2  ;;  %v2784_v7 = vld [vmem:[%s4614_s7 + $0xa4] ss:$16 sps:$4 sm:$0xff]   ;;  %v2786_v8 = vld [vmem:[%s4614_s7 + $0xac] ss:$16 sps:$4 sm:$0xff]  }
  0x26   : > { %1491 = vmatprep.subr.bf16.mxu0 %v2778_v1  ;;  %v679_v9 = vld [vmem:[%s2925_s22 + $0x80] sm:$0xff]  ;;  %v681_v43 = vld [vmem:[%s2925_s22 + $0x90] sm:$0xff]  ;;  %v945_v46 = vld [vmem:[%s3001_s29 + $0x98] sm:$0xff] }
  0x27   : > { %1685 = vmatpush1.bf16.msra.mxu1 %v2783_v5  ;;  %v2788_v10 = vld [vmem:[%s4614_s7 + $0xa0] ss:$16 sps:$4 sm:$0xff]   ;;  %v684_v50 = vld [vmem:[%s2925_s22 + $0xa8] sm:$0xff]  ;;  %v686_v58 = vld [vmem:[%s2925_s22 + $0xb8] sm:$0xff] }
  0x28   : > { %522 = vperm.xlu1 %2753, %v443_v11   ;;  %517 = vperm.xlu0 %2752, %v442_v12   ;;  %v2789_v11 = vld [vmem:[%s4614_s7 + $0xa8] ss:$16 sps:$4 sm:$0xff]   ;;  %v928_v12 = vld [vmem:[%s3001_s29 + $0x10] sm:$0xff]  ;;  %v946_v55 = vld [vmem:[%s3001_s29 + $0xa0] sm:$0xff] }
  0x29   : > { %1492 = vmatpush1.bf16.msra.mxu0 %v2782_v4  ;;  %1686 = vmatprep.subr.bf16.mxu1 %v2786_v8  ;;  %v944_v47 = vld [vmem:[%s3001_s29 + $0x90] sm:$0xff]  ;;  %v949_v62 = vld [vmem:[%s3001_s29 + $0xb8] sm:$0xff]  ;;  %v687_v4 = vld [vmem:[%s2925_s22 + $0xc0] sm:$0xff] }
  0x2a   : > { %1493 = vmatprep.subr.bf16.mxu0 %v2784_v7  ;;  %v685_v59 = vld [vmem:[%s2925_s22 + $0xb0] sm:$0xff]  ;;  %v951_v7 = vld [vmem:[%s3001_s29 + $0xc8] sm:$0xff]  ;;  %v950_v8 = vld [vmem:[%s3001_s29 + $0xc0] sm:$0xff] }
  0x2b   : > { %1687 = vmatpush1.bf16.msra.mxu1 %v2789_v11  ;;  %v690_v11 = vld [vmem:[%s2925_s22 + $0xd8] sm:$0xff] }
  0x2c   : > { %532 = vperm.xlu1 %2753, %v445_v13   ;;  %527 = vperm.xlu0 %2752, %v444_v14   ;;  %v2790_v13 = vld [vmem:[%s4614_s7 + $0xc4] ss:$16 sps:$4 sm:$0xff]   ;;  %v2792_v14 = vld [vmem:[%s4614_s7 + $0xcc] ss:$16 sps:$4 sm:$0xff]  }
  0x2d   : > { %1494 = vmatpush1.bf16.msra.mxu0 %v2788_v10  ;;  %1688 = vmatprep.subr.bf16.mxu1 %v2792_v14 }
  0x2e   : > { %1495 = vmatprep.subr.bf16.mxu0 %v2790_v13 }
  0x30   : > { %542 = vperm.xlu1 %2753, %v447_v15   ;;  %537 = vperm.xlu0 %2752, %v446_v16   ;;  %v927_v15 = vld [vmem:[%s3001_s29 + $0x8] sm:$0xff]  ;;  %v2794_v16 = vld [vmem:[%s4614_s7 + $0xc0] ss:$16 sps:$4 sm:$0xff]  }
  0x31   : > { %1496 = vmatpush1.bf16.msra.mxu0 %v2794_v16  ;;  %v952_v16 = vld [vmem:[%s3001_s29 + $0xd0] sm:$0xff] }
  0x34   : > { %552 = vperm.xlu1 %2753, %v449_v17   ;;  %547 = vperm.xlu0 %2752, %v448_v18   ;;  %v2795_v17 = vld [vmem:[%s4614_s7 + $0xc8] ss:$16 sps:$4 sm:$0xff]   ;;  %v930_v18 = vld [vmem:[%s3001_s29 + $0x20] sm:$0xff] }
  0x35   : > { %1689 = vmatpush1.bf16.msra.mxu1 %v2795_v17 }
  0x38   : > { %562 = vperm.xlu1 %2753, %v451_v19   ;;  %557 = vperm.xlu0 %2752, %v450_v20   ;;  %v2796_v19 = vld [vmem:[%s4614_s7 + $0xe4] ss:$16 sps:$4 sm:$0xff]   ;;  %v2798_v20 = vld [vmem:[%s4614_s7 + $0xec] ss:$16 sps:$4 sm:$0xff]  }
  0x39   : > { %1497 = vmatprep.subr.bf16.mxu0 %v2796_v19  ;;  %1690 = vmatprep.subr.bf16.mxu1 %v2798_v20  ;;  %v692_v19 = vld [vmem:[%s2925_s22 + $0xe8] sm:$0xff]  ;;  %v691_v20 = vld [vmem:[%s2925_s22 + $0xe0] sm:$0xff] }
  0x3c   : > { %572 = vperm.xlu1 %2753, %v453_v21   ;;  %567 = vperm.xlu0 %2752, %v452_v22   ;;  %v929_v21 = vld [vmem:[%s3001_s29 + $0x18] sm:$0xff]  ;;  %v2800_v22 = vld [vmem:[%s4614_s7 + $0xe0] ss:$16 sps:$4 sm:$0xff]  }
  0x3d   : > { %1498 = vmatpush1.bf16.msra.mxu0 %v2800_v22 }
  0x40   : > { %582 = vperm.xlu1 %2753, %v455_v23   ;;  %577 = vperm.xlu0 %2752, %v454_v24   ;;  %v2801_v23 = vld [vmem:[%s4614_s7 + $0xe8] ss:$16 sps:$4 sm:$0xff]   ;;  %v932_v24 = vld [vmem:[%s3001_s29 + $0x30] sm:$0xff] }
  0x41   : > { %1691 = vmatpush1.bf16.msra.mxu1 %v2801_v23  ;;  %v955_v23 = vld [vmem:[%s3001_s29 + $0xe8] sm:$0xff] }
  0x44   : > { %592 = vperm.xlu1 %2753, %v457_v25   ;;  %587 = vperm.xlu0 %2752, %v456_v26   ;;  %v931_v25 = vld [vmem:[%s3001_s29 + $0x28] sm:$0xff]  ;;  %v934_v26 = vld [vmem:[%s3001_s29 + $0x40] sm:$0xff] }
  0x48   : > { %602 = vperm.xlu1 %2753, %v459_v27   ;;  %597 = vperm.xlu0 %2752, %v458_v28   ;;  %v933_v27 = vld [vmem:[%s3001_s29 + $0x38] sm:$0xff]  ;;  %v936_v28 = vld [vmem:[%s3001_s29 + $0x50] sm:$0xff] }
  0x4c   : > { %612 = vperm.xlu1 %2753, %v461_v29   ;;  %607 = vperm.xlu0 %2752, %v460_v30   ;;  %v935_v29 = vld [vmem:[%s3001_s29 + $0x48] sm:$0xff]  ;;  %v938_v30 = vld [vmem:[%s3001_s29 + $0x60] sm:$0xff] }
  0x50   : > { %622 = vperm.xlu1 %2753, %v463_v31   ;;  %617 = vperm.xlu0 %2752, %v462_v32   ;;  %v937_v31 = vld [vmem:[%s3001_s29 + $0x58] sm:$0xff]  ;;  %v940_v32 = vld [vmem:[%s3001_s29 + $0x70] sm:$0xff] }
  0x54   : > { %703 = vperm.xlu1 %2753, %v664_v33   ;;  %698 = vperm.xlu0 %2752, %v663_v34   ;;  %v939_v33 = vld [vmem:[%s3001_s29 + $0x68] sm:$0xff] }
  0x55   : > { %v680_v34 = vld [vmem:[%s2925_s22 + $0x88] sm:$0xff] }
  0x58   : > { %713 = vperm.xlu1 %2753, %v666_v35   ;;  %708 = vperm.xlu0 %2752, %v665_v36   ;;  %v941_v35 = vld [vmem:[%s3001_s29 + $0x78] sm:$0xff] }
  0x5c   : > { %723 = vperm.xlu1 %2753, %v668_v37   ;;  %718 = vperm.xlu0 %2752, %v667_v38   ;;  %v943_v38 = vld [vmem:[%s3001_s29 + $0x88] sm:$0xff] }
  0x60   : > { %733 = vperm.xlu1 %2753, %v670_v39   ;;  %728 = vperm.xlu0 %2752, %v669_v42   ;;  %v942_v39 = vld [vmem:[%s3001_s29 + $0x80] sm:$0xff]  ;;  %v682_v42 = vld [vmem:[%s2925_s22 + $0x98] sm:$0xff] }
  0x64   : > { %743 = vperm.xlu1 %2753, %v672_v45   ;;  %738 = vperm.xlu0 %2752, %v671_v48  }
  0x68   : > { %753 = vperm.xlu1 %2753, %v674_v51   ;;  %748 = vperm.xlu0 %2752, %v673_v54   ;;  %v683_v51 = vld [vmem:[%s2925_s22 + $0xa0] sm:$0xff]  ;;  %v947_v54 = vld [vmem:[%s3001_s29 + $0xa8] sm:$0xff] }
  0x6c   : > { %763 = vperm.xlu1 %2753, %v676_v57   ;;  %758 = vperm.xlu0 %2752, %v675_v60  }
  0x70   : > { %773 = vperm.xlu1 %2753, %v678_v63   ;;  %768 = vperm.xlu0 %2752, %v677_v3   ;;  %v948_v63 = vld [vmem:[%s3001_s29 + $0xb0] sm:$0xff]  ;;  %v688_v3 = vld [vmem:[%s2925_s22 + $0xc8] sm:$0xff] }
  0x74   : > { %961 = vperm.xlu1 %2753, %v926_v6   ;;  %778 = vperm.xlu0 %2752, %v679_v9  }
  0x78   : > { %971 = vperm.xlu1 %2753, %v928_v12   ;;  %966 = vperm.xlu0 %2752, %v927_v15   ;;  %v689_v12 = vld [vmem:[%s2925_s22 + $0xd0] sm:$0xff]  ;;  %v953_v15 = vld [vmem:[%s3001_s29 + $0xd8] sm:$0xff] }
  0x7c   : > { %981 = vperm.xlu1 %2753, %v930_v18   ;;  %976 = vperm.xlu0 %2752, %v929_v21  }
  0x80   : > { %991 = vperm.xlu1 %2753, %v932_v24   ;;  %986 = vperm.xlu0 %2752, %v931_v25   ;;  %v954_v24 = vld [vmem:[%s3001_s29 + $0xe0] sm:$0xff] }
  0x84   : > { %1001 = vperm.xlu1 %2753, %v934_v26   ;;  %996 = vperm.xlu0 %2752, %v933_v27   ;;  %v694_v27 = vld [vmem:[%s2925_s22 + $0xf8] sm:$0xff] }
  0x88   : > { %1011 = vperm.xlu1 %2753, %v936_v28   ;;  %1006 = vperm.xlu0 %2752, %v935_v29   ;;  %v693_v28 = vld [vmem:[%s2925_s22 + $0xf0] sm:$0xff] }
  0x8c   : > { %1021 = vperm.xlu1 %2753, %v938_v30   ;;  %1016 = vperm.xlu0 %2752, %v937_v31   ;;  %v957_v31 = vld [vmem:[%s3001_s29 + $0xf8] sm:$0xff] }
  0x90   : > { %1031 = vperm.xlu1 %2753, %v940_v32   ;;  %1026 = vperm.xlu0 %2752, %v939_v33   ;;  %v956_v32 = vld [vmem:[%s3001_s29 + $0xf0] sm:$0xff] }
  0x93   : > { %v3063_v36 = vpop.permute.xlu1 %477  ;;  %v3065_v37 = vpop.permute.xlu0 %467 }
  0x94   : > { %783 = vperm.xlu1 %2753, %v680_v34   ;;  %1036 = vperm.xlu0 %2752, %v941_v35  }
  0x97   : > { %v3069_v40 = vpop.permute.xlu1 %482  ;;  %v3071_v41 = vpop.permute.xlu0 %472 }
  0x98   : > { %1046 = vperm.xlu1 %2753, %v943_v38   ;;  %1041 = vperm.xlu0 %2752, %v942_v39  }
  0x9b   : > { %v3075_v44 = vpop.permute.xlu1 %492  ;;  %v3077_v45 = vpop.permute.xlu0 %487 }
  0x9c   : > { %793 = vperm.xlu1 %2753, %v682_v42   ;;  %788 = vperm.xlu0 %2752, %v681_v43  }
  0x9f   : > { %v3081_v48 = vpop.permute.xlu1 %502  ;;  %v3083_v49 = vpop.permute.xlu0 %497 }
  0xa0   : > { %1056 = vperm.xlu1 %2753, %v945_v46   ;;  %1051 = vperm.xlu0 %2752, %v944_v47  }
  0xa3   : > { %v3087_v52 = vpop.permute.xlu1 %512  ;;  %v3089_v53 = vpop.permute.xlu0 %507 }
  0xa4   : > { %803 = vperm.xlu1 %2753, %v684_v50   ;;  %798 = vperm.xlu0 %2752, %v683_v51  }
  0xa7   : > { %v3093_v56 = vpop.permute.xlu1 %522  ;;  %v3095_v57 = vpop.permute.xlu0 %517 }
  0xa8   : > { %1066 = vperm.xlu1 %2753, %v947_v54   ;;  %1061 = vperm.xlu0 %2752, %v946_v55  }
  0xab   : > { %v3099_v60 = vpop.permute.xlu1 %532  ;;  %v3101_v61 = vpop.permute.xlu0 %527 }
  0xac   : > { %813 = vperm.xlu1 %2753, %v686_v58   ;;  %808 = vperm.xlu0 %2752, %v685_v59  }
  0xaf   : > { %v3105_v1 = vpop.permute.xlu1 %542  ;;  %v3107_v2 = vpop.permute.xlu0 %537 }
  0xb0   : > { %1076 = vperm.xlu1 %2753, %v949_v62   ;;  %1071 = vperm.xlu0 %2752, %v948_v63   ;;  %v3170_v63 = vld [vmem:[%s4612_s5] ss:$0 sm:$0xff] }
  0xb3   : > { %v3111_v5 = vpop.permute.xlu1 %552  ;;  %v3113_v6 = vpop.permute.xlu0 %547 }
  0xb4   : > { %823 = vperm.xlu1 %2753, %v688_v3   ;;  %818 = vperm.xlu0 %2752, %v687_v4   ;;  %v3175_v3 = vld [vmem:[%s4611_s4] ss:$0 sm:$0xff] }
  0xb7   : > { %v3117_v9 = vpop.permute.xlu1 %562  ;;  %v3119_v10 = vpop.permute.xlu0 %557 }
  0xb8   : > { %1086 = vperm.xlu1 %2753, %v951_v7   ;;  %1081 = vperm.xlu0 %2752, %v950_v8  }
  0xbb   : > { %v3123_v13 = vpop.permute.xlu1 %572  ;;  %v3125_v14 = vpop.permute.xlu0 %567 }
  0xbc   : > { %833 = vperm.xlu1 %2753, %v690_v11   ;;  %828 = vperm.xlu0 %2752, %v689_v12   ;;  %v3185_v11 = vld [vmem:[%s4613_s6] ss:$0 sm:$0xff]  ;;  %v631_v12 = vmul.f32 %v3175_v3, %v3065_v37 }
  0xbf   : > { %v3129_v17 = vpop.permute.xlu1 %582  ;;  %v3131_v18 = vpop.permute.xlu0 %577 }
  0xc0   : > { %1096 = vperm.xlu1 %2753, %v953_v15   ;;  %1091 = vperm.xlu0 %2752, %v952_v16  }
  0xc3   : > { %v3135_v21 = vpop.permute.xlu1 %592  ;;  %v3137_v22 = vpop.permute.xlu0 %587 }
  0xc4   : > { %843 = vperm.xlu1 %2753, %v692_v19   ;;  %838 = vperm.xlu0 %2752, %v691_v20  }
  0xc7   : > { %v3141_v25 = vpop.permute.xlu1 %602  ;;  %v3143_v26 = vpop.permute.xlu0 %597 }
  0xc8   : > { %1106 = vperm.xlu1 %2753, %v955_v23   ;;  %1101 = vperm.xlu0 %2752, %v954_v24  }
  0xcb   : > { %v3147_v29 = vpop.permute.xlu1 %612  ;;  %v3149_v30 = vpop.permute.xlu0 %607 }
  0xcc   : > { %853 = vperm.xlu1 %2753, %v694_v27   ;;  %848 = vperm.xlu0 %2752, %v693_v28   ;;  %v633_v27 = vmul.f32 %v3175_v3, %v3063_v36  ;;  %v632_v28 = vmul.f32 %v3175_v3, %v3071_v41  ;;  %v634_v36 = vmul.f32 %v3175_v3, %v3069_v40 }
  0xcd   : > { %v635_v41 = vmul.f32 %v3175_v3, %v3077_v45  ;;  %v636_v45 = vmul.f32 %v3175_v3, %v3075_v44 }
  0xcf   : > { %v3153_v33 = vpop.permute.xlu1 %622  ;;  %v3155_v34 = vpop.permute.xlu0 %617 }
  0xd0   : > { %4642 = vst [vmem:[#allocation2_spill] sm:$0xff] %v3155_v34  ;;  %1116 = vperm.xlu1 %2753, %v957_v31   ;;  %1111 = vperm.xlu0 %2752, %v956_v32  }
  0xd3   : > { %v704_v35 = vpop.permute.xlu1 %703  ;;  %v699_v38 = vpop.permute.xlu0 %698 }
  0xd4   : > { %v862_v8 = vmul.f32 %v3170_v63, %v699_v38  ;;  %v863_v19 = vmul.f32 %v3170_v63, %v704_v35 }
  0xd6   : > { %v894_v24 = vadd.f32 %v862_v8, %v631_v12  ;;  %v895_v8 = vadd.f32 %v863_v19, %v632_v28 }
  0xd7   : > { %v714_v39 = vpop.permute.xlu1 %713  ;;  %v709_v42 = vpop.permute.xlu0 %708 }
  0xd8   : > { %v864_v20 = vmul.f32 %v3170_v63, %v709_v42  ;;  %v865_v32 = vmul.f32 %v3170_v63, %v714_v39 }
  0xda   : > { %v896_v34 = vadd.f32 %v864_v20, %v633_v27  ;;  %v897_v39 = vadd.f32 %v865_v32, %v634_v36 }
  0xdb   : > { %v724_v43 = vpop.permute.xlu1 %723  ;;  %v719_v46 = vpop.permute.xlu0 %718 }
  0xdc   : > { %v866_v37 = vmul.f32 %v3170_v63, %v719_v46  ;;  %v867_v46 = vmul.f32 %v3170_v63, %v724_v43 }
  0xdf   : > { %v734_v47 = vpop.permute.xlu1 %733  ;;  %v729_v50 = vpop.permute.xlu0 %728 }
  0xe0   : > { %v868_v20 = vmul.f32 %v3170_v63, %v729_v50  ;;  %v899_v50 = vadd.f32 %v867_v46, %v636_v45  ;;  %v869_v32 = vmul.f32 %v3170_v63, %v734_v47  ;;  %v639_v47 = vmul.f32 %v3175_v3, %v3089_v53 }
  0xe3   : > { %v3157_v51 = vpop.permute.xlu1 %743  ;;  %v739_v54 = vpop.permute.xlu0 %738 }
  0xe7   : > { %v3159_v55 = vpop.permute.xlu1 %753  ;;  %v3161_v58 = vpop.permute.xlu0 %748 }
  0xe8   : > { %v872_v46 = vmul.f32 %v3170_v63, %v3161_v58 }
  0xeb   : > { %v3163_v59 = vpop.permute.xlu1 %763  ;;  %v3165_v62 = vpop.permute.xlu0 %758 }
  0xec   : > { %v874_v45 = vmul.f32 %v3170_v63, %v3165_v62  ;;  %v643_v62 = vmul.f32 %v3175_v3, %v3101_v61 }
  0xef   : > { %v3177_v4 = vpop.permute.xlu1 %773  ;;  %v3179_v7 = vpop.permute.xlu0 %768 }
  0xf3   : > { %v962_v15 = vpop.permute.xlu1 %961  ;;  %v3189_v16 = vpop.permute.xlu0 %778 }
  0xf4   : > { %v1125_v23 = vmul.f32 %v3185_v11, %v962_v15 }
  0xf6   : > { %v1157_v31 = vadd.f32 %v1125_v23, %v894_v24  ;;  %v898_v23 = vadd.f32 %v866_v37, %v635_v41  ;;  %v870_v37 = vmul.f32 %v3170_v63, %v739_v54 }
  0xf7   : > { %v972_v38 = vpop.permute.xlu1 %971  ;;  %v967_v0 = vpop.permute.xlu0 %966 }
  0xf8   : > { %v1127_v35 = vmul.f32 %v3185_v11, %v972_v38  ;;  %v1126_v42 = vmul.f32 %v3185_v11, %v967_v0  ;;  %1189 = vmax.xlane.f32.xlu0 %v1157_v31 }
  0xfa   : > { %v1159_v12 = vadd.f32 %v1127_v35, %v896_v34  ;;  %v1158_v15 = vadd.f32 %v1126_v42, %v895_v8  ;;  %v637_v34 = vmul.f32 %v3175_v3, %v3083_v49  ;;  %v4643_v42 = vmov 0  }
  0xfb   : > { %v982_v24 = vpop.permute.xlu1 %981  ;;  %v977_v27 = vpop.permute.xlu0 %976  ;;  %v638_v8 = vmul.f32 %v3175_v3, %v3081_v48 }
  0xfc   : > { %v1129_v0 = vmul.f32 %v3185_v11, %v982_v24  ;;  %v1128_v19 = vmul.f32 %v3185_v11, %v977_v27  ;;  %1193 = vmax.xlane.f32.xlu0 %v1159_v12  ;;  %1191 = vmax.xlane.f32.xlu1 %v1158_v15  ;;  %v1253_v40 = vpack.c.bf16 %v1158_v15, %v1157_v31 }
  0xfd   : > { %v900_v44 = vadd.f32 %v868_v20, %v637_v34  ;;  %v901_v41 = vadd.f32 %v869_v32, %v638_v8  ;;  %v871_v15 = vmul.f32 %v3170_v63, %v3157_v51  ;;  %v640_v27 = vmul.f32 %v3175_v3, %v3087_v52 }
  0xfe   : > { %v3214_v28 = vadd.f32 %v1129_v0, %v898_v23  ;;  %v1160_v43 = vadd.f32 %v1128_v19, %v897_v39  ;;  %1516 = vmatmul.mubr.bf16.vlgmr.msra.gmra.mrb[0].mxu0 %v1253_v40  ;;  %1709 = vmatmul.mubr.bf16.vlgmr.msra.gmra.mrb[0].mxu1 %v1253_v40  ;;  %v902_v39 = vadd.f32 %v870_v37, %v639_v47 }
  0xff   : > { %v992_v38 = vpop.permute.xlu1 %991  ;;  %v987_v35 = vpop.permute.xlu0 %986  ;;  %1525 = vmatprep.mubr.bf16.mxu0 %v4643_v42  ;;  %1718 = vmatprep.mubr.bf16.mxu1 %v4643_v42  ;;  %v641_v51 = vmul.f32 %v3175_v3, %v3095_v57  ;;  %v903_v58 = vadd.f32 %v871_v15, %v640_v27  ;;  %v873_v40 = vmul.f32 %v3170_v63, %v3159_v55 }
 0x100   : > { %v1131_v31 = vmul.f32 %v3185_v11, %v992_v38  ;;  %v1130_v49 = vmul.f32 %v3185_v11, %v987_v35  ;;  %1197 = vmax.xlane.f32.xlu1 %v3214_v28  ;;  %1195 = vmax.xlane.f32.xlu0 %v1160_v43  ;;  %v1254_v53 = vpack.c.bf16 %v1160_v43, %v1159_v12 }
 0x101   : > { %v904_v52 = vadd.f32 %v872_v46, %v641_v51  ;;  %v642_v55 = vmul.f32 %v3175_v3, %v3093_v56  ;;  %v875_v38 = vmul.f32 %v3170_v63, %v3163_v59  ;;  %v906_v35 = vadd.f32 %v874_v45, %v643_v62 }
 0x102   : > { %v3227_v54 = vadd.f32 %v1131_v31, %v900_v44  ;;  %v1162_v36 = vadd.f32 %v1130_v49, %v899_v50  ;;  %v876_v44 = vmul.f32 %v3170_v63, %v3179_v7  ;;  %v644_v47 = vmul.f32 %v3175_v3, %v3099_v60 }
 0x103   : > { %v1002_v23 = vpop.permute.xlu1 %1001  ;;  %v997_v20 = vpop.permute.xlu0 %996  ;;  %v905_v37 = vadd.f32 %v873_v40, %v642_v55  ;;  %v645_v59 = vmul.f32 %v3175_v3, %v3107_v2  ;;  %v648_v40 = vmul.f32 %v3175_v3, %v3111_v5  ;;  %v647_v45 = vmul.f32 %v3175_v3, %v3113_v6 }
 0x104   : > { %v1133_v24 = vmul.f32 %v3185_v11, %v1002_v23  ;;  %v1132_v48 = vmul.f32 %v3185_v11, %v997_v20  ;;  %1201 = vmax.xlane.f32.xlu1 %v3227_v54  ;;  %1199 = vmax.xlane.f32.xlu0 %v1162_v36  ;;  %v1255_v61 = vpack.c.bf16 %v1162_v36, %v3214_v28 }
 0x105   : > { %v907_v15 = vadd.f32 %v875_v38, %v644_v47  ;;  %v908_v60 = vadd.f32 %v876_v44, %v645_v59  ;;  %v646_v36 = vmul.f32 %v3175_v3, %v3105_v1  ;;  %v649_v44 = vmul.f32 %v3175_v3, %v3119_v10 }
 0x106   : > { %v3240_v0 = vadd.f32 %v1133_v24, %v902_v39  ;;  %v1164_v19 = vadd.f32 %v1132_v48, %v901_v41  ;;  %1526 = vmatmul.mubr.bf16.gmra.mrb[4].mxu0 %v1254_v53  ;;  %1719 = vmatmul.mubr.bf16.gmra.mrb[4].mxu1 %v1254_v53  ;;  %v877_v39 = vmul.f32 %v3170_v63, %v3177_v4 }
 0x107   : > { %v1012_v34 = vpop.permute.xlu1 %1011  ;;  %v1007_v12 = vpop.permute.xlu0 %1006  ;;  %1535 = vmatprep.mubr.bf16.mxu0 %v4643_v42  ;;  %1728 = vmatprep.mubr.bf16.mxu1 %v4643_v42  ;;  %v878_v48 = vmul.f32 %v3170_v63, %v3189_v16 }
 0x108   : > { %v1135_v57 = vmul.f32 %v3185_v11, %v1012_v34  ;;  %v1134_v43 = vmul.f32 %v3185_v11, %v1007_v12  ;;  %1205 = vmax.xlane.f32.xlu1 %v3240_v0  ;;  %1203 = vmax.xlane.f32.xlu0 %v1164_v19  ;;  %v909_v24 = vadd.f32 %v877_v39, %v646_v36 }
 0x109   : > { %v1256_v1 = vpack.c.bf16 %v1164_v19, %v3227_v54 }
 0x10a   : > { %v3255_v50 = vadd.f32 %v1135_v57, %v904_v52  ;;  %v3257_v32 = vadd.f32 %v1134_v43, %v903_v58  ;;  %v910_v52 = vadd.f32 %v878_v48, %v647_v45 }
 0x10b   : > { %v1022_v31 = vpop.permute.xlu1 %1021  ;;  %v1017_v49 = vpop.permute.xlu0 %1016 }
 0x10c   : > { %v1137_v8 = vmul.f32 %v3185_v11, %v1022_v31  ;;  %v1136_v56 = vmul.f32 %v3185_v11, %v1017_v49  ;;  %1209 = vmax.xlane.f32.xlu1 %v3255_v50  ;;  %1207 = vmax.xlane.f32.xlu0 %v3257_v32  ;;  %v1257_v38 = vpack.c.bf16 %v3257_v32, %v3240_v0 }
 0x10e   : > { %v3272_v41 = vadd.f32 %v1137_v8, %v906_v35  ;;  %v3274_v7 = vadd.f32 %v1136_v56, %v905_v37  ;;  %1536 = vmatmul.mubr.bf16.gmra.mrb[8].mxu0 %v1255_v61  ;;  %1729 = vmatmul.mubr.bf16.gmra.mrb[8].mxu1 %v1255_v61  ;;  %v650_v35 = vmul.f32 %v3175_v3, %v3117_v9 }
 0x10f   : > { %v1032_v46 = vpop.permute.xlu1 %1031  ;;  %v1027_v23 = vpop.permute.xlu0 %1026  ;;  %1545 = vmatprep.mubr.bf16.mxu0 %v4643_v42  ;;  %1738 = vmatprep.mubr.bf16.mxu1 %v4643_v42 }
 0x110   : > { %v1139_v28 = vmul.f32 %v3185_v11, %v1032_v46  ;;  %v1138_v2 = vmul.f32 %v3185_v11, %v1027_v23  ;;  %1213 = vmax.xlane.f32.xlu1 %v3272_v41  ;;  %1211 = vmax.xlane.f32.xlu0 %v3274_v7  ;;  %v1258_v39 = vpack.c.bf16 %v3274_v7, %v3255_v50 }
 0x111   : > { %v652_v46 = vmul.f32 %v3175_v3, %v3123_v13  ;;  %v651_v23 = vmul.f32 %v3175_v3, %v3125_v14 }
 0x112   : > { %v3286_v20 = vadd.f32 %v1139_v28, %v908_v60  ;;  %v3288_v4 = vadd.f32 %v1138_v2, %v907_v15 }
 0x113   : > { %v784_v53 = vpop.permute.xlu1 %783  ;;  %v1037_v27 = vpop.permute.xlu0 %1036 }
 0x114   : > { %v879_v51 = vmul.f32 %v3170_v63, %v784_v53  ;;  %v1140_v58 = vmul.f32 %v3185_v11, %v1037_v27  ;;  %1217 = vmax.xlane.f32.xlu1 %v3286_v20  ;;  %1215 = vmax.xlane.f32.xlu0 %v3288_v4 }
 0x116   : > { %v3301_v34 = vadd.f32 %v1140_v58, %v909_v24  ;;  %1546 = vmatmul.mubr.bf16.gmra.mrb[12].mxu0 %v1256_v1  ;;  %1739 = vmatmul.mubr.bf16.gmra.mrb[12].mxu1 %v1256_v1  ;;  %v911_v57 = vadd.f32 %v879_v51, %v648_v40  ;;  %v1259_v51 = vpack.c.bf16 %v3288_v4, %v3272_v41 }
 0x117   : > { %v1047_v16 = vpop.permute.xlu1 %1046  ;;  %v1042_v12 = vpop.permute.xlu0 %1041  ;;  %1555 = vmatprep.mubr.bf16.mxu0 %v4643_v42  ;;  %1748 = vmatprep.mubr.bf16.mxu1 %v4643_v42  ;;  %v654_v58 = vmul.f32 %v3175_v3, %v3129_v17  ;;  %v653_v1 = vmul.f32 %v3175_v3, %v3131_v18 }
 0x118   : > { %v1142_v54 = vmul.f32 %v3185_v11, %v1047_v16  ;;  %v1141_v19 = vmul.f32 %v3185_v11, %v1042_v12  ;;  %1219 = vmax.xlane.f32.xlu0 %v3301_v34 }
 0x11a   : > { %v3308_v5 = vadd.f32 %v1142_v54, %v911_v57  ;;  %v3310_v6 = vadd.f32 %v1141_v19, %v910_v52 }
 0x11b   : > { %v794_v43 = vpop.permute.xlu1 %793  ;;  %v789_v55 = vpop.permute.xlu0 %788 }
 0x11c   : > { %v881_v62 = vmul.f32 %v3170_v63, %v794_v43  ;;  %v880_v37 = vmul.f32 %v3170_v63, %v789_v55  ;;  %1223 = vmax.xlane.f32.xlu0 %v3308_v5  ;;  %1221 = vmax.xlane.f32.xlu1 %v3310_v6  ;;  %v1260_v43 = vpack.c.bf16 %v3301_v34, %v3286_v20 }
 0x11d   : > { %v656_v55 = vmul.f32 %v3175_v3, %v3135_v21 }
 0x11e   : > { %1556 = vmatmul.mubr.bf16.gmra.mrb[16].mxu0 %v1257_v38  ;;  %1749 = vmatmul.mubr.bf16.gmra.mrb[16].mxu1 %v1257_v38  ;;  %v913_v8 = vadd.f32 %v881_v62, %v650_v35  ;;  %v912_v56 = vadd.f32 %v880_v37, %v649_v44  ;;  %v655_v62 = vmul.f32 %v3175_v3, %v3137_v22 }
 0x11f   : > { %v1057_v31 = vpop.permute.xlu1 %1056  ;;  %v1052_v49 = vpop.permute.xlu0 %1051  ;;  %1565 = vmatprep.mubr.bf16.mxu0 %v4643_v42  ;;  %1758 = vmatprep.mubr.bf16.mxu1 %v4643_v42 }
 0x120   : > { %v1144_v61 = vmul.f32 %v3185_v11, %v1057_v31  ;;  %v1143_v0 = vmul.f32 %v3185_v11, %v1052_v49 }
 0x122   : > { %v3326_v32 = vadd.f32 %v1144_v61, %v913_v8  ;;  %v3328_v9 = vadd.f32 %v1143_v0, %v912_v56  ;;  %v1261_v61 = vpack.c.bf16 %v3308_v5, %v3310_v6  ;;  %v658_v0 = vmul.f32 %v3175_v3, %v3141_v25 }
 0x123   : > { %v804_v47 = vpop.permute.xlu1 %803  ;;  %v799_v10 = vpop.permute.xlu0 %798 }
 0x124   : > { %v883_v59 = vmul.f32 %v3170_v63, %v804_v47  ;;  %v882_v15 = vmul.f32 %v3170_v63, %v799_v10  ;;  %1227 = vmax.xlane.f32.xlu0 %v3326_v32  ;;  %1225 = vmax.xlane.f32.xlu1 %v3328_v9  ;;  %v657_v47 = vmul.f32 %v3175_v3, %v3143_v26 }
 0x126   : > { %1566 = vmatmul.mubr.bf16.gmra.mrb[20].mxu0 %v1258_v39  ;;  %1759 = vmatmul.mubr.bf16.gmra.mrb[20].mxu1 %v1258_v39  ;;  %v915_v2 = vadd.f32 %v883_v59, %v652_v46  ;;  %v914_v36 = vadd.f32 %v882_v15, %v651_v23 }
 0x127   : > { %v1067_v60 = vpop.permute.xlu1 %1066  ;;  %v1062_v28 = vpop.permute.xlu0 %1061  ;;  %1575 = vmatprep.mubr.bf16.mxu0 %v4643_v42  ;;  %1768 = vmatprep.mubr.bf16.mxu1 %v4643_v42 }
 0x128   : > { %v1146_v24 = vmul.f32 %v3185_v11, %v1067_v60  ;;  %v1145_v50 = vmul.f32 %v3185_v11, %v1062_v28 }
 0x12a   : > { %v3344_v7 = vadd.f32 %v1146_v24, %v915_v2  ;;  %v3346_v13 = vadd.f32 %v1145_v50, %v914_v36  ;;  %v1262_v2 = vpack.c.bf16 %v3326_v32, %v3328_v9  ;;  %v660_v36 = vmul.f32 %v3175_v3, %v3147_v29 }
 0x12b   : > { %v814_v48 = vpop.permute.xlu1 %813  ;;  %v809_v14 = vpop.permute.xlu0 %808  ;;  %v659_v24 = vmul.f32 %v3175_v3, %v3149_v30 }
 0x12c   : > { %v885_v53 = vmul.f32 %v3170_v63, %v814_v48  ;;  %v884_v27 = vmul.f32 %v3170_v63, %v809_v14  ;;  %1231 = vmax.xlane.f32.xlu0 %v3344_v7  ;;  %1229 = vmax.xlane.f32.xlu1 %v3346_v13 }
 0x12e   : > { %1576 = vmatmul.mubr.bf16.gmra.mrb[24].mxu0 %v1259_v51  ;;  %1769 = vmatmul.mubr.bf16.gmra.mrb[24].mxu1 %v1259_v51  ;;  %v917_v16 = vadd.f32 %v885_v53, %v654_v58  ;;  %v916_v12 = vadd.f32 %v884_v27, %v653_v1 }
 0x12f   : > { %v1077_v40 = vpop.permute.xlu1 %1076  ;;  %v1072_v45 = vpop.permute.xlu0 %1071  ;;  %1585 = vmatprep.mubr.bf16.mxu0 %v4643_v42  ;;  %1778 = vmatprep.mubr.bf16.mxu1 %v4643_v42 }
 0x130   : > { %v1148_v52 = vmul.f32 %v3185_v11, %v1077_v40  ;;  %v1147_v41 = vmul.f32 %v3185_v11, %v1072_v45  ;;  %v1263_v40 = vpack.c.bf16 %v3344_v7, %v3346_v13  ;;  %v662_v45 = vmul.f32 %v3175_v3, %v3153_v33 }
 0x132   : > { %v3362_v4 = vadd.f32 %v1148_v52, %v917_v16  ;;  %v3364_v17 = vadd.f32 %v1147_v41, %v916_v12  ;;  %v4644_v16 = vld [vmem:[#allocation2_spill] sm:$0xff] }
 0x133   : > { %v824_v57 = vpop.permute.xlu1 %823  ;;  %v819_v18 = vpop.permute.xlu0 %818  ;;  %v661_v12 = vmul.f32 %v3175_v3, %v4644_v16 }
 0x134   : > { %v887_v54 = vmul.f32 %v3170_v63, %v824_v57  ;;  %v886_v19 = vmul.f32 %v3170_v63, %v819_v18  ;;  %1235 = vmax.xlane.f32.xlu0 %v3362_v4  ;;  %1233 = vmax.xlane.f32.xlu1 %v3364_v17  ;;  %v1264_v3 = vpack.c.bf16 %v3362_v4, %v3364_v17  ;;  %v1871_v17 = vld [vmem:[%s3434_s17 + $0x10] sm:$0xff] }
 0x136   : > { %1586 = vmatmul.mubr.bf16.gmra.mrb[28].mxu0 %v1260_v43  ;;  %1779 = vmatmul.mubr.bf16.gmra.mrb[28].mxu1 %v1260_v43  ;;  %v919_v35 = vadd.f32 %v887_v54, %v656_v55  ;;  %v918_v44 = vadd.f32 %v886_v19, %v655_v62  ;;  %v1870_v19 = vld [vmem:[%s3434_s17 + $0x8] sm:$0xff]  ;;  %v1872_v43 = vld [vmem:[%s3434_s17 + $0x18] sm:$0xff]  ;;  %v1873_v55 = vld [vmem:[%s3434_s17 + $0x20] sm:$0xff] }
 0x137   : > { %v1087_v37 = vpop.permute.xlu1 %1086  ;;  %v1082_v38 = vpop.permute.xlu0 %1081  ;;  %1595 = vmatprep.mubr.bf16.mxu0 %v4643_v42  ;;  %1788 = vmatprep.mubr.bf16.mxu1 %v4643_v42 }
 0x138   : > { %v1150_v31 = vmul.f32 %v3185_v11, %v1087_v37  ;;  %v1149_v20 = vmul.f32 %v3185_v11, %v1082_v38  ;;  %v1874_v37 = vld [vmem:[%s3434_s17 + $0x28] sm:$0xff]  ;;  %v1875_v38 = vld [vmem:[%s3434_s17 + $0x30] sm:$0xff] }
 0x13a   : > { %v3380_v34 = vadd.f32 %v1150_v31, %v919_v35  ;;  %v3382_v21 = vadd.f32 %v1149_v20, %v918_v44  ;;  %v1876_v35 = vld [vmem:[%s3434_s17 + $0x38] sm:$0xff]  ;;  %v1877_v44 = vld [vmem:[%s3434_s17 + $0x40] sm:$0xff]  ;;  %v1878_v20 = vld [vmem:[%s3434_s17 + $0x48] sm:$0xff] }
 0x13b   : > { %v834_v49 = vpop.permute.xlu1 %833  ;;  %v829_v22 = vpop.permute.xlu0 %828 }
 0x13c   : > { %v889_v8 = vmul.f32 %v3170_v63, %v834_v49  ;;  %v888_v56 = vmul.f32 %v3170_v63, %v829_v22  ;;  %1239 = vmax.xlane.f32.xlu0 %v3380_v34  ;;  %1237 = vmax.xlane.f32.xlu1 %v3382_v21  ;;  %v1265_v54 = vpack.c.bf16 %v3380_v34, %v3382_v21  ;;  %v1879_v34 = vld [vmem:[%s3434_s17 + $0x50] sm:$0xff]  ;;  %v1881_v21 = vld [vmem:[%s3434_s17 + $0x60] sm:$0xff]  ;;  %v1882_v49 = vld [vmem:[%s3434_s17 + $0x68] sm:$0xff] }
 0x13d   : > { %v1883_v22 = vld [vmem:[%s3434_s17 + $0x70] sm:$0xff] }
 0x13e   : > { %1596 = vmatmul.mubr.bf16.gmra.mrb[32].mxu0 %v1261_v61  ;;  %1789 = vmatmul.mubr.bf16.gmra.mrb[32].mxu1 %v1261_v61  ;;  %v921_v15 = vadd.f32 %v889_v8, %v658_v0  ;;  %v920_v39 = vadd.f32 %v888_v56, %v657_v47  ;;  %v1884_v8 = vld [vmem:[%s3434_s17 + $0x78] sm:$0xff]  ;;  %v1885_v56 = vld [vmem:[%s3434_s17 + $0x80] sm:$0xff]  ;;  %v1886_v61 = vld [vmem:[%s3434_s17 + $0x88] sm:$0xff] }
 0x13f   : > { %v1097_v10 = vpop.permute.xlu1 %1096  ;;  %v1092_v59 = vpop.permute.xlu0 %1091  ;;  %1605 = vmatprep.mubr.bf16.mxu0 %v4643_v42  ;;  %1798 = vmatprep.mubr.bf16.mxu1 %v4643_v42  ;;  %v1887_v0 = vld [vmem:[%s3434_s17 + $0x90] sm:$0xff]  ;;  %v1888_v47 = vld [vmem:[%s3434_s17 + $0x98] sm:$0xff] }
 0x140   : > { %v1152_v46 = vmul.f32 %v3185_v11, %v1097_v10  ;;  %v1151_v5 = vmul.f32 %v3185_v11, %v1092_v59  ;;  %v1889_v10 = vld [vmem:[%s3434_s17 + $0xa0] sm:$0xff]  ;;  %v1890_v59 = vld [vmem:[%s3434_s17 + $0xa8] sm:$0xff] }
 0x142   : > { %v1184_v6 = vadd.f32 %v1152_v46, %v921_v15  ;;  %v1183_v23 = vadd.f32 %v1151_v5, %v920_v39  ;;  %v1891_v15 = vld [vmem:[%s3434_s17 + $0xb0] sm:$0xff]  ;;  %v1892_v39 = vld [vmem:[%s3434_s17 + $0xb8] sm:$0xff]  ;;  %v1893_v46 = vld [vmem:[%s3434_s17 + $0xc0] sm:$0xff] }
 0x143   : > { %v844_v25 = vpop.permute.xlu1 %843  ;;  %v839_v60 = vpop.permute.xlu0 %838 }
 0x144   : > { %v891_v26 = vmul.f32 %v3170_v63, %v844_v25  ;;  %v890_v28 = vmul.f32 %v3170_v63, %v839_v60  ;;  %1243 = vmax.xlane.f32.xlu0 %v1184_v6  ;;  %1241 = vmax.xlane.f32.xlu1 %v1183_v23  ;;  %v1266_v4 = vpack.c.bf16 %v1184_v6, %v1183_v23  ;;  %v1894_v6 = vld [vmem:[%s3434_s17 + $0xc8] sm:$0xff]  ;;  %v1895_v23 = vld [vmem:[%s3434_s17 + $0xd0] sm:$0xff]  ;;  %v1896_v60 = vld [vmem:[%s3434_s17 + $0xd8] sm:$0xff] }
 0x146   : > { %1606 = vmatmul.mubr.bf16.gmra.mrb[36].mxu0 %v1262_v2  ;;  %1799 = vmatmul.mubr.bf16.gmra.mrb[36].mxu1 %v1262_v2  ;;  %v923_v14 = vadd.f32 %v891_v26, %v660_v36  ;;  %v922_v53 = vadd.f32 %v890_v28, %v659_v24  ;;  %v1897_v26 = vld [vmem:[%s3434_s17 + $0xe0] sm:$0xff]  ;;  %v1898_v2 = vld [vmem:[%s3434_s17 + $0xe8] sm:$0xff]  ;;  %v1899_v36 = vld [vmem:[%s3434_s17 + $0xf0] sm:$0xff] }
 0x147   : > { %v1107_v50 = vpop.permute.xlu1 %1106  ;;  %v1102_v48 = vpop.permute.xlu0 %1101  ;;  %1615 = vmatprep.mubr.bf16.mxu0 %v4643_v42  ;;  %1808 = vmatprep.mubr.bf16.mxu1 %v4643_v42 }
 0x148   : > { %v1154_v27 = vmul.f32 %v3185_v11, %v1107_v50  ;;  %v1153_v32 = vmul.f32 %v3185_v11, %v1102_v48  ;;  %v1900_v50 = vld [vmem:[%s3434_s17 + $0xf8] sm:$0xff] }
 0x14a   : > { %v1186_v9 = vadd.f32 %v1154_v27, %v923_v14  ;;  %v1185_v51 = vadd.f32 %v1153_v32, %v922_v53 }
 0x14b   : > { %v854_v29 = vpop.permute.xlu1 %853  ;;  %v849_v58 = vpop.permute.xlu0 %848 }
 0x14c   : > { %v893_v30 = vmul.f32 %v3170_v63, %v854_v29  ;;  %v892_v1 = vmul.f32 %v3170_v63, %v849_v58  ;;  %1247 = vmax.xlane.f32.xlu0 %v1186_v9  ;;  %1245 = vmax.xlane.f32.xlu1 %v1185_v51  ;;  %v1267_v62 = vpack.c.bf16 %v1186_v9, %v1185_v51 }
 0x14e   : > { %1616 = vmatmul.mubr.bf16.gmra.mrb[40].mxu0 %v1263_v40  ;;  %1809 = vmatmul.mubr.bf16.gmra.mrb[40].mxu1 %v1263_v40  ;;  %v925_v63 = vadd.f32 %v893_v30, %v662_v45  ;;  %v924_v57 = vadd.f32 %v892_v1, %v661_v12 }
 0x14f   : > { %v1117_v52 = vpop.permute.xlu1 %1116  ;;  %v1112_v41 = vpop.permute.xlu0 %1111  ;;  %1625 = vmatprep.mubr.bf16.mxu0 %v4643_v42  ;;  %1818 = vmatprep.mubr.bf16.mxu1 %v4643_v42 }
 0x150   : > { %v1156_v18 = vmul.f32 %v3185_v11, %v1117_v52  ;;  %v1155_v7 = vmul.f32 %v3185_v11, %v1112_v41  ;;  %v1869_v11 = vld [vmem:[%s3434_s17] sm:$0xff] }
 0x152   : > { %v1188_v13 = vadd.f32 %v1156_v18, %v925_v63  ;;  %v1187_v33 = vadd.f32 %v1155_v7, %v924_v57 }
 0x154   : > { %1251 = vmax.xlane.f32.xlu0 %v1188_v13  ;;  %1249 = vmax.xlane.f32.xlu1 %v1187_v33  ;;  %v1268_v31 = vpack.c.bf16 %v1188_v13, %v1187_v33  ;;  %v1303_v13 = vlaneseq }
 0x156   : > { %1626 = vmatmul.mubr.bf16.gmra.mrb[44].mxu0 %v1264_v3  ;;  %1819 = vmatmul.mubr.bf16.gmra.mrb[44].mxu1 %v1264_v3 }
 0x157   : > { %1635 = vmatprep.mubr.bf16.mxu0 %v4643_v42  ;;  %1828 = vmatprep.mubr.bf16.mxu1 %v4643_v42 }
 0x15e   : > { %1636 = vmatmul.mubr.bf16.gmra.mrb[48].mxu0 %v1265_v54  ;;  %1829 = vmatmul.mubr.bf16.gmra.mrb[48].mxu1 %v1265_v54 }
 0x15f   : > { %1645 = vmatprep.mubr.bf16.mxu0 %v4643_v42  ;;  %1838 = vmatprep.mubr.bf16.mxu1 %v4643_v42 }
 0x165   : > { %1904 = vperm.xlu1 %2753, %v1869_v11  }
 0x166   : > { %1646 = vmatmul.mubr.bf16.gmra.mrb[52].mxu0 %v1266_v4  ;;  %1839 = vmatmul.mubr.bf16.gmra.mrb[52].mxu1 %v1266_v4 }
 0x167   : > { %1655 = vmatprep.mubr.bf16.mxu0 %v4643_v42  ;;  %1848 = vmatprep.mubr.bf16.mxu1 %v4643_v42 }
 0x169   : > { %1914 = vperm.xlu1 %2753, %v1871_v17  }
 0x16a   : > { %1909 = vperm.xlu0 %2752, %v1870_v19  }
 0x16d   : > { %1919 = vperm.xlu1 %2753, %v1872_v43  }
 0x16e   : > { %1924 = vperm.xlu0 %2752, %v1873_v55   ;;  %1656 = vmatmul.mubr.bf16.gmra.mrb[56].mxu0 %v1267_v62  ;;  %v1304_v55 = vshrl.u32 %v1303_v13, 7 }
 0x16f   : > { %1849 = vmatmul.mubr.bf16.gmra.mrb[56].mxu1 %v1267_v62  ;;  %1665 = vmatprep.mubr.bf16.mxu0 %v4643_v42 }
 0x170   : > { %1858 = vmatprep.mubr.bf16.mxu1 %v4643_v42  ;;  %v1880_v42 = vld [vmem:[%s3434_s17 + $0x58] sm:$0xff] }
 0x171   : > { %1929 = vperm.xlu1 %2753, %v1874_v37  }
 0x172   : > { %1934 = vperm.xlu0 %2752, %v1875_v38  }
 0x175   : > { %1939 = vperm.xlu1 %2753, %v1876_v35   ;;  %v1305_v35 = vsub.s32 0, %v1304_v55 }
 0x176   : > { %1944 = vperm.xlu0 %2752, %v1877_v44   ;;  %1666 = vmatmul.mubr.bf16.gmra.mrb[60].mxu0 %v1268_v31  ;;  %v1313_v44 = vsub.s32 2, %v1304_v55 }
 0x177   : > { %1859 = vmatmul.mubr.bf16.gmra.mrb[60].mxu1 %v1268_v31 }
 0x179   : > { %1949 = vperm.xlu1 %2753, %v1878_v20   ;;  %v1301_v20 = vld [vmem:[%s4615_s8] sm:$0xf] }
 0x17a   : > { %1954 = vperm.xlu0 %2752, %v1879_v34   ;;  %v1309_v34 = vsub.s32 1, %v1304_v55 }
 0x17d   : > { %1959 = vperm.xlu1 %2753, %v1880_v42   ;;  %v1317_v42 = vsub.s32 3, %v1304_v55 }
 0x17e   : > { %1964 = vperm.xlu0 %2752, %v1881_v21  }
 0x181   : > { %1969 = vperm.xlu1 %2753, %v1882_v49  }
 0x182   : > { %1974 = vperm.xlu0 %2752, %v1883_v22  }
 0x185   : > { %1979 = vperm.xlu1 %2753, %v1884_v8   ;;  %v3465_v5 = vpop.xlane.xlu0 %1189 }
 0x186   : > { %1984 = vperm.xlu0 %2752, %v1885_v56  }
 0x189   : > { %1989 = vperm.xlu1 %2753, %v1886_v61   ;;  %v3469_v25 = vpop.xlane.xlu0 %1193  ;;  %v3473_v28 = vpop.xlane.xlu1 %1191 }
 0x18a   : > { %1994 = vperm.xlu0 %2752, %v1887_v0   ;;  %v3529_v0 = vrot.slane %v1301_v20, %v1305_v35 }
 0x18d   : > { %1999 = vperm.xlu1 %2753, %v1888_v47   ;;  %v3477_v24 = vpop.xlane.xlu0 %1195  ;;  %v3480_v48 = vpop.xlane.xlu1 %1197  ;;  %v3531_v47 = vrot.slane %v1301_v20, %v1313_v44 }
 0x18e   : > { %2004 = vperm.xlu0 %2752, %v1889_v10  }
 0x191   : > { %2009 = vperm.xlu1 %2753, %v1890_v59   ;;  %v3482_v14 = vpop.xlane.xlu0 %1199  ;;  %v3484_v53 = vpop.xlane.xlu1 %1201 }
 0x192   : > { %2014 = vperm.xlu0 %2752, %v1891_v15   ;;  %v1901_v15 = vld [vmem:[%s4616_s9] sm:$0xf] }
 0x193   : > { %v3554_v55 = vrot.slane %v1901_v15, %v1313_v44 }
 0x195   : > { %2019 = vperm.xlu1 %2753, %v1892_v39   ;;  %v3486_v27 = vpop.xlane.xlu0 %1203  ;;  %v3488_v32 = vpop.xlane.xlu1 %1205  ;;  %v3540_v39 = vrot.slane %v1301_v20, %v1309_v34 }
 0x196   : > { %2024 = vperm.xlu0 %2752, %v1893_v46   ;;  %v3542_v46 = vrot.slane %v1301_v20, %v1317_v42 }
 0x199   : > { %2029 = vperm.xlu1 %2753, %v1894_v6   ;;  %v3490_v9 = vpop.xlane.xlu0 %1207  ;;  %v3492_v51 = vpop.xlane.xlu1 %1209 }
 0x19a   : > { %2034 = vperm.xlu0 %2752, %v1895_v23   ;;  %4645 = vst [vmem:[#allocation2_spill] sm:$0xff] %v3492_v51 }
 0x19d   : > { %2039 = vperm.xlu1 %2753, %v1896_v60   ;;  %v3494_v29 = vpop.xlane.xlu0 %1211  ;;  %v3496_v58 = vpop.xlane.xlu1 %1213  ;;  %v3544_v60 = vrot.slane %v1901_v15, %v1305_v35 }
 0x19e   : > { %2044 = vperm.xlu0 %2752, %v1897_v26   ;;  %4646 = vst [vmem:[#allocation3_spill] sm:$0xff] %v3494_v29  ;;  %4647 = vst [vmem:[#allocation4_spill] sm:$0xff] %v3496_v58  ;;  %v3546_v26 = vrot.slane %v1901_v15, %v1309_v34 }
 0x1a1   : > { %2049 = vperm.xlu1 %2753, %v1898_v2   ;;  %v3498_v30 = vpop.xlane.xlu0 %1215  ;;  %v3500_v1 = vpop.xlane.xlu1 %1217 }
 0x1a2   : > { %2054 = vperm.xlu0 %2752, %v1899_v36   ;;  %4648 = vst [vmem:[#allocation5_spill] sm:$0xff] %v3498_v30  ;;  %4649 = vst [vmem:[#allocation6_spill] sm:$0xff] %v3500_v1 }
 0x1a5   : > { %2059 = vperm.xlu1 %2753, %v1900_v50   ;;  %v3502_v40 = vpop.xlane.xlu0 %1219 }
 0x1a6   : > { %4650 = vst [vmem:[#allocation7_spill] sm:$0xff] %v3502_v40 }
 0x1a9   : > { %v3504_v45 = vpop.xlane.xlu1 %1221  ;;  %v3506_v16 = vpop.xlane.xlu0 %1223 }
 0x1aa   : > { %4651 = vst [vmem:[#allocation8_spill] sm:$0xff] %v3504_v45  ;;  %4652 = vst [vmem:[#allocation9_spill] sm:$0xff] %v3506_v16 }
 0x1b1   : > { %v3508_v12 = vpop.xlane.xlu1 %1225  ;;  %v3510_v52 = vpop.xlane.xlu0 %1227 }
 0x1b2   : > { %4653 = vst [vmem:[#allocation10_spill] sm:$0xff] %v3508_v12  ;;  %4654 = vst [vmem:[#allocation11_spill] sm:$0xff] %v3510_v52 }
 0x1b9   : > { %v3512_v41 = vpop.xlane.xlu1 %1229  ;;  %v3514_v18 = vpop.xlane.xlu0 %1231 }
 0x1ba   : > { %4655 = vst [vmem:[#allocation12_spill] sm:$0xff] %v3512_v41  ;;  %4656 = vst [vmem:[#allocation13_spill] sm:$0xff] %v3514_v18 }
 0x1c1   : > { %v3516_v7 = vpop.xlane.xlu1 %1233  ;;  %v3518_v19 = vpop.xlane.xlu0 %1235 }
 0x1c2   : > { %4657 = vst [vmem:[#allocation14_spill] sm:$0xff] %v3516_v7  ;;  %4658 = vst [vmem:[#allocation15_spill] sm:$0xff] %v3518_v19 }
 0x1c9   : > { %v3520_v43 = vpop.xlane.xlu1 %1237  ;;  %v3522_v38 = vpop.xlane.xlu0 %1239 }
 0x1ca   : > { %4659 = vst [vmem:[#allocation16_spill] sm:$0xff] %v3520_v43  ;;  %4660 = vst [vmem:[#allocation17_spill] sm:$0xff] %v3522_v38 }
 0x1d1   : > { %v1517_v63 = vpop.f32.mrb[0].mxu0  ;;  %v1710_v57 = vpop.f32.mrb[0].mxu1 }
 0x1d2   : > { %v1519_v33 = vpop.f32.mrb[1].mxu0  ;;  %v1712_v3 = vpop.f32.mrb[1].mxu1  ;;  %v1518_v2 = vadd.f32 %v1517_v63, %v3529_v0  ;;  %v1711_v36 = vadd.f32 %v1710_v57, %v3531_v47 }
 0x1d3   : > { %v1521_v54 = vpop.f32.mrb[2].mxu0  ;;  %v1714_v11 = vpop.f32.mrb[2].mxu1  ;;  %v1520_v20 = vadd.f32 %v1519_v33, %v3540_v39 }
 0x1d4   : > { %v1523_v4 = vpop.f32.mrb[3].mxu0  ;;  %v1716_v17 = vpop.f32.mrb[3].mxu1  ;;  %v3561_v35 = vadd.f32 %v1521_v54, %v3529_v0  ;;  %v3564_v34 = vadd.f32 %v1714_v11, %v3531_v47 }
 0x1d5   : > { %v3524_v31 = vpop.xlane.xlu1 %1241  ;;  %v3533_v10 = vpop.xlane.xlu0 %1243  ;;  %v3570_v44 = vadd.f32 %v1716_v17, %v3542_v46 }
 0x1d6   : > { %4661 = vst [vmem:[#allocation18_spill] sm:$0xff] %v3524_v31  ;;  %4662 = vst [vmem:[#allocation19_spill] sm:$0xff] %v3533_v10  ;;  %v1713_v10 = vadd.f32 %v1712_v3, %v3542_v46 }
 0x1d9   : > { %v1527_v62 = vpop.f32.mrb[4].mxu0  ;;  %v1720_v37 = vpop.f32.mrb[4].mxu1 }
 0x1da   : > { %v1529_v21 = vpop.f32.mrb[5].mxu0  ;;  %v1722_v49 = vpop.f32.mrb[5].mxu1  ;;  %v1721_v33 = vadd.f32 %v1720_v37, %v3531_v47 }
 0x1db   : > { %v1531_v22 = vpop.f32.mrb[6].mxu0  ;;  %v1724_v8 = vpop.f32.mrb[6].mxu1  ;;  %v1530_v54 = vadd.f32 %v1529_v21, %v3540_v39  ;;  %v1723_v11 = vadd.f32 %v1722_v49, %v3542_v46 }
 0x1dc   : > { %v1533_v56 = vpop.f32.mrb[7].mxu0  ;;  %v1726_v61 = vpop.f32.mrb[7].mxu1 }
 0x1dd   : > { %v3535_v59 = vpop.xlane.xlu1 %1245  ;;  %v3550_v50 = vpop.xlane.xlu0 %1247  ;;  %v3583_v38 = vadd.f32 %v1533_v56, %v3540_v39 }
 0x1de   : > { %4663 = vst [vmem:[#allocation20_spill] sm:$0xff] %v3535_v59  ;;  %4664 = vst [vmem:[#allocation21_spill] sm:$0xff] %v3550_v50  ;;  %v3556_v59 = vrot.slane %v1901_v15, %v1317_v42  ;;  %v3567_v50 = vadd.f32 %v1523_v4, %v3540_v39  ;;  %v1528_v42 = vadd.f32 %v1527_v62, %v3529_v0 }
 0x1df   : > { %v3580_v4 = vadd.f32 %v1724_v8, %v3531_v47  ;;  %v3586_v62 = vadd.f32 %v1726_v61, %v3542_v46 }
 0x1e1   : > { %v1537_v6 = vpop.f32.mrb[8].mxu0  ;;  %v1730_v23 = vpop.f32.mrb[8].mxu1 }
 0x1e2   : > { %v3552_v13 = vpop.xlane.xlu1 %1249  ;;  %v1539_v63 = vpop.f32.mrb[9].mxu0  ;;  %v3589_v37 = vadd.f32 %v1537_v6, %v3529_v0  ;;  %v3592_v21 = vadd.f32 %v1730_v23, %v3531_v47 }
 0x1e3   : > { %4665 = vst [vmem:[#allocation22_spill] sm:$0xff] %v3552_v13  ;;  %v1732_v57 = vpop.f32.mrb[9].mxu1  ;;  %v1541_v3 = vpop.f32.mrb[10].mxu0  ;;  %v3577_v13 = vadd.f32 %v1531_v22, %v3529_v0  ;;  %v3602_v61 = vadd.f32 %v1539_v63, %v3540_v39 }
 0x1e4   : > { %v1734_v15 = vpop.f32.mrb[10].mxu1  ;;  %v1543_v31 = vpop.f32.mrb[11].mxu0  ;;  %v3605_v6 = vadd.f32 %v1732_v57, %v3542_v46  ;;  %v3608_v23 = vadd.f32 %v1541_v3, %v3529_v0 }
 0x1e5   : > { %v1736_v17 = vpop.f32.mrb[11].mxu1  ;;  %v3594_v49 = vpop.xlane.xlu0 %1251  ;;  %v3619_v63 = vadd.f32 %v1543_v31, %v3540_v39 }
 0x1e6   : > { %4666 = vst [vmem:[#allocation23_spill] sm:$0xff] %v3594_v49  ;;  %v1905_v22 = vpop.permute.xlu1 %1904  ;;  %v3611_v49 = vadd.f32 %v1734_v15, %v3531_v47  ;;  %v3622_v57 = vadd.f32 %v1736_v17, %v3542_v46 }
 0x1e7   : > { %v2083_v8 = vmul.f32 %v3544_v60, %v1905_v22  ;;  %v2084_v43 = vmul.f32 %v3546_v26, %v1905_v22  ;;  %v2085_v56 = vmul.f32 %v3554_v55, %v1905_v22  ;;  %v2086_v19 = vmul.f32 %v3556_v59, %v1905_v22 }
 0x1e9   : > { %v2211_v7 = vadd.f32 %v2083_v8, %v1518_v2  ;;  %v2212_v18 = vadd.f32 %v2084_v43, %v1520_v20  ;;  %v2213_v41 = vadd.f32 %v2085_v56, %v1711_v36  ;;  %v2214_v52 = vadd.f32 %v2086_v19, %v1713_v10  ;;  %v1547_v12 = vpop.f32.mrb[12].mxu0  ;;  %v1740_v16 = vpop.f32.mrb[12].mxu1 }
 0x1ea   : > { %v3625_v3 = vadd.f32 %v1547_v12, %v3529_v0  ;;  %v3628_v43 = vadd.f32 %v1740_v16, %v3531_v47  ;;  %v1915_v19 = vpop.permute.xlu1 %1914  ;;  %v1910_v10 = vpop.permute.xlu0 %1909 }
 0x1eb   : > { %v2339_v2 = vadd.f32 %v2211_v7, %v3465_v5  ;;  %v2340_v31 = vadd.f32 %v2212_v18, %v3465_v5  ;;  %v2341_v36 = vadd.f32 %v2213_v41, %v3465_v5  ;;  %v2342_v20 = vadd.f32 %v2214_v52, %v3465_v5  ;;  %v1549_v15 = vpop.f32.mrb[13].mxu0  ;;  %v1742_v12 = vpop.f32.mrb[13].mxu1 }
 0x1ec   : > { %v2091_v17 = vmul.f32 %v3544_v60, %v1915_v19  ;;  %v2092_v16 = vmul.f32 %v3546_v26, %v1915_v19  ;;  %v2093_v22 = vmul.f32 %v3554_v55, %v1915_v19  ;;  %v2094_v8 = vmul.f32 %v3556_v59, %v1915_v19  ;;  %v1551_v56 = vpop.f32.mrb[14].mxu0  ;;  %v1744_v45 = vpop.f32.mrb[14].mxu1 }
 0x1ed   : > { %2467 = vst [vmem:[%s3616_s24] sm:$0xff] %v2339_v2  ;;  %2468 = vst [vmem:[%s3616_s24 + $0x8] sm:$0xff] %v2340_v31  ;;  %v2087_v41 = vmul.f32 %v3544_v60, %v1910_v10  ;;  %v2088_v5 = vmul.f32 %v3546_v26, %v1910_v10  ;;  %v2089_v52 = vmul.f32 %v3554_v55, %v1910_v10  ;;  %v1553_v7 = vpop.f32.mrb[15].mxu0  ;;  %v1746_v40 = vpop.f32.mrb[15].mxu1 }
 0x1ee   : > { %2469 = vst [vmem:[%s3616_s24 + $0x10] sm:$0xff] %v2341_v36  ;;  %2470 = vst [vmem:[%s3616_s24 + $0x18] sm:$0xff] %v2342_v20  ;;  %v2090_v18 = vmul.f32 %v3556_v59, %v1910_v10  ;;  %v2219_v1 = vadd.f32 %v2091_v17, %v1528_v42  ;;  %v2220_v30 = vadd.f32 %v2092_v16, %v1530_v54  ;;  %v1920_v29 = vpop.permute.xlu1 %1919  ;;  %v1925_v2 = vpop.permute.xlu0 %1924 }
 0x1ef   : > { %v2221_v58 = vadd.f32 %v2093_v22, %v1721_v33  ;;  %v2222_v19 = vadd.f32 %v2094_v8, %v1723_v11  ;;  %v2215_v31 = vadd.f32 %v2087_v41, %v3561_v35  ;;  %v2216_v36 = vadd.f32 %v2088_v5, %v3567_v50 }
 0x1f0   : > { %v2217_v20 = vadd.f32 %v2089_v52, %v3564_v34  ;;  %v2218_v10 = vadd.f32 %v2090_v18, %v3570_v44  ;;  %v2347_v51 = vadd.f32 %v2219_v1, %v3469_v25  ;;  %v2348_v42 = vadd.f32 %v2220_v30, %v3469_v25 }
 0x1f1   : > { %v2349_v33 = vadd.f32 %v2221_v58, %v3469_v25  ;;  %v2350_v54 = vadd.f32 %v2222_v19, %v3469_v25  ;;  %v2343_v11 = vadd.f32 %v2215_v31, %v3473_v28  ;;  %v2344_v35 = vadd.f32 %v2216_v36, %v3473_v28  ;;  %v1557_v44 = vpop.f32.mrb[16].mxu0  ;;  %v1750_v1 = vpop.f32.mrb[16].mxu1 }
 0x1f2   : > { %v2345_v50 = vadd.f32 %v2217_v20, %v3473_v28  ;;  %v2346_v34 = vadd.f32 %v2218_v10, %v3473_v28  ;;  %2475 = vst [vmem:[%s3616_s24 + $0x40] sm:$0xff] %v2347_v51  ;;  %2476 = vst [vmem:[%s3616_s24 + $0x48] sm:$0xff] %v2348_v42  ;;  %v3663_v25 = vadd.f32 %v1549_v15, %v3540_v39  ;;  %v1930_v28 = vpop.permute.xlu1 %1929  ;;  %v1935_v16 = vpop.permute.xlu0 %1934 }
 0x1f3   : > { %2477 = vst [vmem:[%s3616_s24 + $0x50] sm:$0xff] %v2349_v33  ;;  %2478 = vst [vmem:[%s3616_s24 + $0x58] sm:$0xff] %v2350_v54  ;;  %v3666_v58 = vadd.f32 %v1742_v12, %v3542_v46  ;;  %v3669_v30 = vadd.f32 %v1551_v56, %v3529_v0  ;;  %v3672_v17 = vadd.f32 %v1744_v45, %v3531_v47  ;;  %v3686_v8 = vpop.f32.mrb[17].mxu0  ;;  %v3688_v45 = vpop.f32.mrb[17].mxu1 }
 0x1f4   : > { %2471 = vst [vmem:[%s3616_s24 + $0x20] sm:$0xff] %v2343_v11  ;;  %2472 = vst [vmem:[%s3616_s24 + $0x28] sm:$0xff] %v2344_v35  ;;  %v3679_v51 = vadd.f32 %v1553_v7, %v3540_v39  ;;  %v3682_v15 = vadd.f32 %v1746_v40, %v3542_v46  ;;  %v2095_v12 = vmul.f32 %v3544_v60, %v1920_v29  ;;  %v3694_v18 = vpop.f32.mrb[18].mxu0  ;;  %v3696_v40 = vpop.f32.mrb[18].mxu1 }
 0x1f5   : > { %2473 = vst [vmem:[%s3616_s24 + $0x30] sm:$0xff] %v2345_v50  ;;  %2474 = vst [vmem:[%s3616_s24 + $0x38] sm:$0xff] %v2346_v34  ;;  %v2096_v22 = vmul.f32 %v3546_v26, %v1920_v29  ;;  %v2097_v56 = vmul.f32 %v3554_v55, %v1920_v29  ;;  %v2098_v41 = vmul.f32 %v3556_v59, %v1920_v29  ;;  %v3702_v20 = vpop.f32.mrb[19].mxu0  ;;  %v3704_v29 = vpop.f32.mrb[19].mxu1 }
 0x1f6   : > { %v2099_v5 = vmul.f32 %v3544_v60, %v1925_v2  ;;  %v2100_v52 = vmul.f32 %v3546_v26, %v1925_v2  ;;  %v2223_v7 = vadd.f32 %v2095_v12, %v3577_v13  ;;  %v2101_v31 = vmul.f32 %v3554_v55, %v1925_v2  ;;  %v3710_v54 = vpop.permute.xlu1 %1939 }
 0x1f7   : > { %v2224_v19 = vadd.f32 %v2096_v22, %v3583_v38  ;;  %v2102_v36 = vmul.f32 %v3556_v59, %v1925_v2  ;;  %v2225_v10 = vadd.f32 %v2097_v56, %v3580_v4  ;;  %v2226_v42 = vadd.f32 %v2098_v41, %v3586_v62  ;;  %v3712_v38 = vpop.permute.xlu0 %1944 }
 0x1f8   : > { %v2227_v33 = vadd.f32 %v2099_v5, %v3589_v37  ;;  %v2228_v13 = vadd.f32 %v2100_v52, %v3602_v61  ;;  %v2351_v2 = vadd.f32 %v2223_v7, %v3477_v24  ;;  %v2229_v35 = vadd.f32 %v2101_v31, %v3592_v21 }
 0x1f9   : > { %v2352_v11 = vadd.f32 %v2224_v19, %v3477_v24  ;;  %v2230_v4 = vadd.f32 %v2102_v36, %v3605_v6  ;;  %v2353_v62 = vadd.f32 %v2225_v10, %v3477_v24  ;;  %v2354_v37 = vadd.f32 %v2226_v42, %v3477_v24  ;;  %v3732_v22 = vpop.f32.mrb[20].mxu0  ;;  %v3734_v24 = vpop.f32.mrb[20].mxu1 }
 0x1fa   : > { %v2355_v61 = vadd.f32 %v2227_v33, %v3480_v48  ;;  %v2356_v50 = vadd.f32 %v2228_v13, %v3480_v48  ;;  %2479 = vst [vmem:[%s3616_s24 + $0x60] sm:$0xff] %v2351_v2  ;;  %v2357_v34 = vadd.f32 %v2229_v35, %v3480_v48  ;;  %v3727_v21 = vadd.f32 %v1557_v44, %v3529_v0  ;;  %v3744_v5 = vpop.permute.xlu1 %1949  ;;  %v3754_v36 = vpop.f32.mrb[21].mxu0 }
 0x1fb   : > { %2480 = vst [vmem:[%s3616_s24 + $0x68] sm:$0xff] %v2352_v11  ;;  %v2358_v12 = vadd.f32 %v2230_v4, %v3480_v48  ;;  %v3730_v6 = vadd.f32 %v1750_v1, %v3531_v47  ;;  %2481 = vst [vmem:[%s3616_s24 + $0x70] sm:$0xff] %v2353_v62  ;;  %v2103_v56 = vmul.f32 %v3544_v60, %v1930_v28  ;;  %v3746_v1 = vpop.permute.xlu0 %1954  ;;  %v3756_v10 = vpop.f32.mrb[21].mxu1 }
 0x1fc   : > { %2482 = vst [vmem:[%s3616_s24 + $0x78] sm:$0xff] %v2354_v37  ;;  %2483 = vst [vmem:[%s3616_s24 + $0x80] sm:$0xff] %v2355_v61  ;;  %v2104_v41 = vmul.f32 %v3546_v26, %v1930_v28  ;;  %v2105_v48 = vmul.f32 %v3554_v55, %v1930_v28  ;;  %v2106_v44 = vmul.f32 %v3556_v59, %v1930_v28  ;;  %v3762_v2 = vpop.f32.mrb[22].mxu0  ;;  %v3764_v11 = vpop.f32.mrb[22].mxu1 }
 0x1fd   : > { %2484 = vst [vmem:[%s3616_s24 + $0x88] sm:$0xff] %v2356_v50  ;;  %2485 = vst [vmem:[%s3616_s24 + $0x90] sm:$0xff] %v2357_v34  ;;  %v2107_v52 = vmul.f32 %v3544_v60, %v1935_v16  ;;  %v2108_v7 = vmul.f32 %v3546_v26, %v1935_v16  ;;  %v2109_v19 = vmul.f32 %v3554_v55, %v1935_v16 }
 0x1fe   : > { %2486 = vst [vmem:[%s3616_s24 + $0x98] sm:$0xff] %v2358_v12  ;;  %v2110_v31 = vmul.f32 %v3556_v59, %v1935_v16  ;;  %v2231_v28 = vadd.f32 %v2103_v56, %v3608_v23  ;;  %v2232_v42 = vadd.f32 %v2104_v41, %v3619_v63  ;;  %v2233_v33 = vadd.f32 %v2105_v48, %v3611_v49  ;;  %v3770_v63 = vpop.f32.mrb[23].mxu0  ;;  %v3772_v49 = vpop.f32.mrb[23].mxu1 }
 0x1ff   : > { %v2234_v13 = vadd.f32 %v2106_v44, %v3622_v57  ;;  %v2235_v35 = vadd.f32 %v2107_v52, %v3625_v3  ;;  %v2236_v16 = vadd.f32 %v2108_v7, %v3663_v25  ;;  %v2237_v4 = vadd.f32 %v2109_v19, %v3628_v43  ;;  %v3778_v37 = vpop.permute.xlu1 %1959  ;;  %v3780_v43 = vpop.permute.xlu0 %1964 }
 0x200   : > { %v2238_v23 = vadd.f32 %v2110_v31, %v3666_v58  ;;  %v2359_v57 = vadd.f32 %v2231_v28, %v3482_v14  ;;  %v2360_v62 = vadd.f32 %v2232_v42, %v3482_v14  ;;  %v2361_v3 = vadd.f32 %v2233_v33, %v3482_v14 }
 0x201   : > { %v2362_v25 = vadd.f32 %v2234_v13, %v3482_v14  ;;  %v2363_v58 = vadd.f32 %v2235_v35, %v3484_v53  ;;  %v2364_v61 = vadd.f32 %v2236_v16, %v3484_v53  ;;  %v2365_v50 = vadd.f32 %v2237_v4, %v3484_v53  ;;  %v3814_v48 = vpop.f32.mrb[24].mxu0 }
 0x202   : > { %v2366_v34 = vadd.f32 %v2238_v23, %v3484_v53  ;;  %2487 = vst [vmem:[%s3616_s24 + $0xa0] sm:$0xff] %v2359_v57  ;;  %2488 = vst [vmem:[%s3616_s24 + $0xa8] sm:$0xff] %v2360_v62  ;;  %v1560_v14 = vadd.f32 %v3686_v8, %v3540_v39  ;;  %v1753_v12 = vadd.f32 %v3688_v45, %v3542_v46  ;;  %v3836_v33 = vpop.f32.mrb[25].mxu0 }
 0x203   : > { %2489 = vst [vmem:[%s3616_s24 + $0xb0] sm:$0xff] %v2361_v3  ;;  %2490 = vst [vmem:[%s3616_s24 + $0xb8] sm:$0xff] %v2362_v25  ;;  %v3796_v56 = vadd.f32 %v3694_v18, %v3529_v0  ;;  %v3800_v41 = vadd.f32 %v3696_v40, %v3531_v47  ;;  %v1564_v53 = vadd.f32 %v3702_v20, %v3540_v39  ;;  %v3816_v40 = vpop.f32.mrb[24].mxu1  ;;  %v3826_v7 = vpop.permute.xlu1 %1969 }
 0x204   : > { %2491 = vst [vmem:[%s3616_s24 + $0xc0] sm:$0xff] %v2363_v58  ;;  %2492 = vst [vmem:[%s3616_s24 + $0xc8] sm:$0xff] %v2364_v61  ;;  %v1757_v8 = vadd.f32 %v3704_v29, %v3542_v46  ;;  %v2111_v45 = vmul.f32 %v3544_v60, %v3710_v54  ;;  %v2112_v18 = vmul.f32 %v3546_v26, %v3710_v54  ;;  %v3828_v19 = vpop.permute.xlu0 %1974  ;;  %v3838_v13 = vpop.f32.mrb[25].mxu1 }
 0x205   : > { %2493 = vst [vmem:[%s3616_s24 + $0xd0] sm:$0xff] %v2365_v50  ;;  %2494 = vst [vmem:[%s3616_s24 + $0xd8] sm:$0xff] %v2366_v34  ;;  %v2113_v44 = vmul.f32 %v3554_v55, %v3710_v54  ;;  %v2114_v52 = vmul.f32 %v3556_v59, %v3710_v54  ;;  %v2115_v20 = vmul.f32 %v3544_v60, %v3712_v38  ;;  %v3845_v23 = vpop.f32.mrb[26].mxu1 }
 0x206   : > { %v2116_v29 = vmul.f32 %v3546_v26, %v3712_v38  ;;  %v2239_v31 = vadd.f32 %v2111_v45, %v3669_v30  ;;  %v2240_v28 = vadd.f32 %v2112_v18, %v3679_v51  ;;  %v2117_v42 = vmul.f32 %v3554_v55, %v3712_v38  ;;  %v3843_v51 = vpop.f32.mrb[26].mxu0 }
 0x207   : > { %v2118_v54 = vmul.f32 %v3556_v59, %v3712_v38  ;;  %v2241_v35 = vadd.f32 %v2113_v44, %v3672_v17  ;;  %v2242_v16 = vadd.f32 %v2114_v52, %v3682_v15  ;;  %v2243_v4 = vadd.f32 %v2115_v20, %v3727_v21  ;;  %v3850_v17 = vpop.f32.mrb[27].mxu0  ;;  %v3852_v15 = vpop.f32.mrb[27].mxu1 }
 0x208   : > { %v2244_v30 = vadd.f32 %v2116_v29, %v1560_v14  ;;  %v2367_v57 = vadd.f32 %v2239_v31, %v3486_v27  ;;  %v2368_v38 = vadd.f32 %v2240_v28, %v3486_v27  ;;  %v2245_v62 = vadd.f32 %v2117_v42, %v3730_v6  ;;  %v3858_v50 = vpop.permute.xlu1 %1979  ;;  %v3860_v6 = vpop.permute.xlu0 %1984 }
 0x209   : > { %v2246_v3 = vadd.f32 %v2118_v54, %v1753_v12  ;;  %v2369_v21 = vadd.f32 %v2241_v35, %v3486_v27  ;;  %v2370_v25 = vadd.f32 %v2242_v16, %v3486_v27  ;;  %v2371_v58 = vadd.f32 %v2243_v4, %v3488_v32  ;;  %v3892_v29 = vpop.f32.mrb[28].mxu0  ;;  %v3894_v31 = vpop.f32.mrb[28].mxu1 }
 0x20a   : > { %v2372_v61 = vadd.f32 %v2244_v30, %v3488_v32  ;;  %2495 = vst [vmem:[%s3616_s24 + $0xe0] sm:$0xff] %v2367_v57  ;;  %2496 = vst [vmem:[%s3616_s24 + $0xe8] sm:$0xff] %v2368_v38  ;;  %v2373_v34 = vadd.f32 %v2245_v62, %v3488_v32  ;;  %v1568_v12 = vadd.f32 %v3732_v22, %v3529_v0  ;;  %v3904_v38 = vpop.f32.mrb[29].mxu0 }
 0x20b   : > { %v2374_v14 = vadd.f32 %v2246_v3, %v3488_v32  ;;  %v1761_v27 = vadd.f32 %v3734_v24, %v3531_v47  ;;  %2497 = vst [vmem:[%s3616_s24 + $0xf0] sm:$0xff] %v2369_v21  ;;  %2498 = vst [vmem:[%s3616_s24 + $0xf8] sm:$0xff] %v2370_v25  ;;  %v2119_v45 = vmul.f32 %v3544_v60, %v3744_v5  ;;  %v3912_v3 = vpop.f32.mrb[30].mxu0 }
 0x20c   : > { %2499 = vst [vmem:[%s3616_s24 + $0x100] sm:$0xff] %v2371_v58  ;;  %2500 = vst [vmem:[%s3616_s24 + $0x108] sm:$0xff] %v2372_v61  ;;  %v2120_v18 = vmul.f32 %v3546_v26, %v3744_v5  ;;  %v2121_v44 = vmul.f32 %v3554_v55, %v3744_v5  ;;  %v2122_v32 = vmul.f32 %v3556_v59, %v3744_v5  ;;  %v3898_v35 = vpop.permute.xlu1 %1989  ;;  %v3900_v16 = vpop.permute.xlu0 %1994 }
 0x20d   : > { %2501 = vst [vmem:[%s3616_s24 + $0x110] sm:$0xff] %v2373_v34  ;;  %2502 = vst [vmem:[%s3616_s24 + $0x118] sm:$0xff] %v2374_v14  ;;  %v2123_v22 = vmul.f32 %v3544_v60, %v3746_v1  ;;  %v2125_v24 = vmul.f32 %v3554_v55, %v3746_v1  ;;  %v1570_v52 = vadd.f32 %v3754_v36, %v3540_v39  ;;  %v3921_v14 = vpop.f32.mrb[31].mxu0 }
 0x20e   : > { %v2124_v20 = vmul.f32 %v3546_v26, %v3746_v1  ;;  %v2247_v5 = vadd.f32 %v2119_v45, %v3796_v56  ;;  %v2248_v28 = vadd.f32 %v2120_v18, %v1564_v53  ;;  %v2249_v42 = vadd.f32 %v2121_v44, %v3800_v41  ;;  %v3906_v56 = vpop.f32.mrb[29].mxu1 }
 0x20f   : > { %v2250_v54 = vadd.f32 %v2122_v32, %v1757_v8  ;;  %v2251_v4 = vadd.f32 %v2123_v22, %v1568_v12  ;;  %v2253_v30 = vadd.f32 %v2125_v24, %v1761_v27  ;;  %v1763_v57 = vadd.f32 %v3756_v10, %v3542_v46  ;;  %v3914_v21 = vpop.f32.mrb[30].mxu1  ;;  %v4667_v10 = vld [vmem:[#allocation2_spill] sm:$0xff] }
 0x210   : > { %v2252_v36 = vadd.f32 %v2124_v20, %v1570_v52  ;;  %v2375_v41 = vadd.f32 %v2247_v5, %v3490_v9  ;;  %v2376_v53 = vadd.f32 %v2248_v28, %v3490_v9  ;;  %v2377_v8 = vadd.f32 %v2249_v42, %v3490_v9  ;;  %v3923_v12 = vpop.f32.mrb[31].mxu1  ;;  %v3937_v18 = vpop.permute.xlu1 %1999 }
 0x211   : > { %v2378_v62 = vadd.f32 %v2250_v54, %v3490_v9  ;;  %v2379_v25 = vadd.f32 %v2251_v4, %v4667_v10  ;;  %v2381_v58 = vadd.f32 %v2253_v30, %v4667_v10  ;;  %v2126_v34 = vmul.f32 %v3556_v59, %v3746_v1  ;;  %v3939_v44 = vpop.permute.xlu0 %2004  ;;  %v3959_v54 = vpop.f32.mrb[32].mxu0 }
 0x212   : > { %v2380_v61 = vadd.f32 %v2252_v36, %v4667_v10  ;;  %2503 = vst [vmem:[%s3616_s24 + $0x120] sm:$0xff] %v2375_v41  ;;  %2504 = vst [vmem:[%s3616_s24 + $0x128] sm:$0xff] %v2376_v53  ;;  %v1572_v9 = vadd.f32 %v3762_v2, %v3529_v0  ;;  %v1765_v27 = vadd.f32 %v3764_v11, %v3531_v47  ;;  %v3961_v4 = vpop.f32.mrb[32].mxu1  ;;  %v4668_v41 = vld [vmem:[#allocation3_spill] sm:$0xff] }
 0x213   : > { %2505 = vst [vmem:[%s3616_s24 + $0x130] sm:$0xff] %v2377_v8  ;;  %2506 = vst [vmem:[%s3616_s24 + $0x138] sm:$0xff] %v2378_v62  ;;  %v1574_v45 = vadd.f32 %v3770_v63, %v3540_v39  ;;  %v1767_v1 = vadd.f32 %v3772_v49, %v3542_v46  ;;  %v2254_v32 = vadd.f32 %v2126_v34, %v1763_v57 }
 0x214   : > { %2507 = vst [vmem:[%s3616_s24 + $0x140] sm:$0xff] %v2379_v25  ;;  %2509 = vst [vmem:[%s3616_s24 + $0x150] sm:$0xff] %v2381_v58  ;;  %v2127_v2 = vmul.f32 %v3544_v60, %v3778_v37  ;;  %v2128_v11 = vmul.f32 %v3546_v26, %v3778_v37  ;;  %v2129_v63 = vmul.f32 %v3554_v55, %v3778_v37  ;;  %v3967_v57 = vpop.permute.xlu1 %2009  ;;  %v3977_v25 = vpop.f32.mrb[33].mxu0 }
 0x215   : > { %2508 = vst [vmem:[%s3616_s24 + $0x148] sm:$0xff] %v2380_v61  ;;  %v2130_v49 = vmul.f32 %v3556_v59, %v3778_v37  ;;  %v1578_v22 = vadd.f32 %v3814_v48, %v3529_v0  ;;  %v2131_v24 = vmul.f32 %v3544_v60, %v3780_v43  ;;  %v1771_v52 = vadd.f32 %v3816_v40, %v3531_v47  ;;  %v3969_v40 = vpop.permute.xlu0 %2014  ;;  %v4669_v61 = vld [vmem:[#allocation4_spill] sm:$0xff] }
 0x216   : > { %v2382_v20 = vadd.f32 %v2254_v32, %v4667_v10  ;;  %v2255_v5 = vadd.f32 %v2127_v2, %v1572_v9  ;;  %v2256_v28 = vadd.f32 %v2128_v11, %v1574_v45  ;;  %v2257_v42 = vadd.f32 %v2129_v63, %v1765_v27  ;;  %v3985_v45 = vpop.f32.mrb[34].mxu0 }
 0x217   : > { %v2258_v37 = vadd.f32 %v2130_v49, %v1767_v1  ;;  %v2259_v30 = vadd.f32 %v2131_v24, %v1578_v22  ;;  %v2133_v48 = vmul.f32 %v3554_v55, %v3780_v43  ;;  %v1580_v36 = vadd.f32 %v3836_v33, %v3540_v39  ;;  %v3979_v33 = vpop.f32.mrb[33].mxu1  ;;  %v3998_v49 = vpop.f32.mrb[35].mxu0 }
 0x218   : > { %2510 = vst [vmem:[%s3616_s24 + $0x158] sm:$0xff] %v2382_v20  ;;  %v2383_v53 = vadd.f32 %v2255_v5, %v4668_v41  ;;  %v2384_v8 = vadd.f32 %v2256_v28, %v4668_v41  ;;  %v2385_v62 = vadd.f32 %v2257_v42, %v4668_v41  ;;  %v2132_v10 = vmul.f32 %v3546_v26, %v3780_v43  ;;  %v3987_v1 = vpop.f32.mrb[34].mxu1 }
 0x219   : > { %v2386_v58 = vadd.f32 %v2258_v37, %v4668_v41  ;;  %v2387_v34 = vadd.f32 %v2259_v30, %v4669_v61  ;;  %v2261_v9 = vadd.f32 %v2133_v48, %v1771_v52  ;;  %v1773_v27 = vadd.f32 %v3838_v13, %v3542_v46  ;;  %v4000_v13 = vpop.f32.mrb[35].mxu1  ;;  %v4670_v48 = vld [vmem:[#allocation5_spill] sm:$0xff] }
 0x21a   : > { %2511 = vst [vmem:[%s3616_s24 + $0x160] sm:$0xff] %v2383_v53  ;;  %2512 = vst [vmem:[%s3616_s24 + $0x168] sm:$0xff] %v2384_v8  ;;  %v2260_v32 = vadd.f32 %v2132_v10, %v1580_v36  ;;  %v2134_v2 = vmul.f32 %v3556_v59, %v3780_v43  ;;  %v1582_v11 = vadd.f32 %v3843_v51, %v3529_v0  ;;  %v4026_v8 = vpop.f32.mrb[36].mxu0 }
 0x21b   : > { %2513 = vst [vmem:[%s3616_s24 + $0x170] sm:$0xff] %v2385_v62  ;;  %v2135_v63 = vmul.f32 %v3544_v60, %v3826_v7  ;;  %2514 = vst [vmem:[%s3616_s24 + $0x178] sm:$0xff] %v2386_v58  ;;  %v2389_v22 = vadd.f32 %v2261_v9, %v4669_v61  ;;  %v1775_v24 = vadd.f32 %v3845_v23, %v3531_v47  ;;  %v4035_v58 = vpop.permute.xlu1 %2019 }
 0x21c   : > { %2515 = vst [vmem:[%s3616_s24 + $0x180] sm:$0xff] %v2387_v34  ;;  %v2137_v43 = vmul.f32 %v3554_v55, %v3826_v7  ;;  %v1584_v51 = vadd.f32 %v3850_v17, %v3540_v39  ;;  %v2388_v52 = vadd.f32 %v2260_v32, %v4669_v61  ;;  %v2262_v20 = vadd.f32 %v2134_v2, %v1773_v27 }
 0x21d   : > { %v2263_v5 = vadd.f32 %v2135_v63, %v1582_v11  ;;  %v2136_v28 = vmul.f32 %v3546_v26, %v3826_v7  ;;  %2517 = vst [vmem:[%s3616_s24 + $0x190] sm:$0xff] %v2389_v22  ;;  %v1777_v37 = vadd.f32 %v3852_v15, %v3542_v46  ;;  %v2138_v23 = vmul.f32 %v3556_v59, %v3826_v7  ;;  %v4028_v15 = vpop.f32.mrb[36].mxu1 }
 0x21e   : > { %v2265_v42 = vadd.f32 %v2137_v43, %v1775_v24  ;;  %v1588_v17 = vadd.f32 %v3892_v29, %v3529_v0  ;;  %2516 = vst [vmem:[%s3616_s24 + $0x188] sm:$0xff] %v2388_v52  ;;  %v2390_v30 = vadd.f32 %v2262_v20, %v4669_v61  ;;  %v2139_v53 = vmul.f32 %v3544_v60, %v3828_v19  ;;  %v4037_v61 = vpop.permute.xlu0 %2024  ;;  %v4048_v2 = vpop.f32.mrb[37].mxu1 }
 0x21f   : > { %v2391_v36 = vadd.f32 %v2263_v5, %v4670_v48  ;;  %v2264_v41 = vadd.f32 %v2136_v28, %v1584_v51  ;;  %v2266_v62 = vadd.f32 %v2138_v23, %v1777_v37  ;;  %v1781_v29 = vadd.f32 %v3894_v31, %v3531_v47  ;;  %v4046_v31 = vpop.f32.mrb[37].mxu0  ;;  %v4058_v43 = vpop.f32.mrb[38].mxu1  ;;  %v4671_v51 = vld [vmem:[#allocation6_spill] sm:$0xff] }
 0x220   : > { %v2393_v7 = vadd.f32 %v2265_v42, %v4670_v48  ;;  %v2141_v10 = vmul.f32 %v3554_v55, %v3828_v19  ;;  %2518 = vst [vmem:[%s3616_s24 + $0x198] sm:$0xff] %v2390_v30  ;;  %v2267_v9 = vadd.f32 %v2139_v53, %v1588_v17  ;;  %v1590_v27 = vadd.f32 %v3904_v38, %v3540_v39  ;;  %v4056_v38 = vpop.f32.mrb[38].mxu0  ;;  %v4068_v42 = vpop.f32.mrb[39].mxu1 }
 0x221   : > { %2519 = vst [vmem:[%s3616_s24 + $0x1a0] sm:$0xff] %v2391_v36  ;;  %v2392_v34 = vadd.f32 %v2264_v41, %v4670_v48  ;;  %v2140_v32 = vmul.f32 %v3546_v26, %v3828_v19  ;;  %v2394_v11 = vadd.f32 %v2266_v62, %v4670_v48  ;;  %v1783_v22 = vadd.f32 %v3906_v56, %v3542_v46  ;;  %v4066_v56 = vpop.f32.mrb[39].mxu0  ;;  %v4672_v62 = vld [vmem:[#allocation7_spill] sm:$0xff] }
 0x222   : > { %2521 = vst [vmem:[%s3616_s24 + $0x1b0] sm:$0xff] %v2393_v7  ;;  %v2269_v63 = vadd.f32 %v2141_v10, %v1781_v29  ;;  %v2142_v24 = vmul.f32 %v3556_v59, %v3828_v19  ;;  %v2395_v52 = vadd.f32 %v2267_v9, %v4671_v51  ;;  %v1592_v5 = vadd.f32 %v3912_v3, %v3529_v0  ;;  %v4094_v9 = vpop.f32.mrb[40].mxu0 }
 0x223   : > { %2520 = vst [vmem:[%s3616_s24 + $0x1a8] sm:$0xff] %v2392_v34  ;;  %v2268_v20 = vadd.f32 %v2140_v32, %v1590_v27  ;;  %v2143_v28 = vmul.f32 %v3544_v60, %v3858_v50  ;;  %2522 = vst [vmem:[%s3616_s24 + $0x1b8] sm:$0xff] %v2394_v11  ;;  %v1785_v23 = vadd.f32 %v3914_v21, %v3531_v47  ;;  %v4096_v27 = vpop.f32.mrb[40].mxu1 }
 0x224   : > { %v2397_v19 = vadd.f32 %v2269_v63, %v4671_v51  ;;  %v2270_v37 = vadd.f32 %v2142_v24, %v1783_v22  ;;  %v2145_v17 = vmul.f32 %v3554_v55, %v3858_v50  ;;  %2523 = vst [vmem:[%s3616_s24 + $0x1c0] sm:$0xff] %v2395_v52  ;;  %v1594_v48 = vadd.f32 %v3921_v14, %v3540_v39  ;;  %v4104_v63 = vpop.permute.xlu1 %2029 }
 0x225   : > { %v2396_v3 = vadd.f32 %v2268_v20, %v4671_v51  ;;  %v2271_v30 = vadd.f32 %v2143_v28, %v1592_v5  ;;  %v2144_v36 = vmul.f32 %v3546_v26, %v3858_v50  ;;  %v1787_v21 = vadd.f32 %v3923_v12, %v3542_v46  ;;  %v4114_v20 = vpop.f32.mrb[41].mxu0 }
 0x226   : > { %2525 = vst [vmem:[%s3616_s24 + $0x1d0] sm:$0xff] %v2397_v19  ;;  %v2398_v41 = vadd.f32 %v2270_v37, %v4671_v51  ;;  %v2273_v53 = vadd.f32 %v2145_v17, %v1785_v23  ;;  %v2146_v7 = vmul.f32 %v3556_v59, %v3858_v50  ;;  %v1598_v14 = vadd.f32 %v3959_v54, %v3529_v0  ;;  %v4106_v54 = vpop.permute.xlu0 %2034  ;;  %v4673_v17 = vld [vmem:[#allocation8_spill] sm:$0xff] }
 0x227   : > { %2524 = vst [vmem:[%s3616_s24 + $0x1c8] sm:$0xff] %v2396_v3  ;;  %v2399_v29 = vadd.f32 %v2271_v30, %v4672_v62  ;;  %v2272_v10 = vadd.f32 %v2144_v36, %v1594_v48  ;;  %v2147_v34 = vmul.f32 %v3544_v60, %v3860_v6  ;;  %v1791_v50 = vadd.f32 %v3961_v4, %v3531_v47  ;;  %v4116_v4 = vpop.f32.mrb[41].mxu1 }
 0x228   : > { %2526 = vst [vmem:[%s3616_s24 + $0x1d8] sm:$0xff] %v2398_v41  ;;  %v2401_v12 = vadd.f32 %v2273_v53, %v4672_v62  ;;  %v2274_v32 = vadd.f32 %v2146_v7, %v1787_v21  ;;  %v2149_v11 = vmul.f32 %v3554_v55, %v3860_v6  ;;  %v1600_v51 = vadd.f32 %v3977_v25, %v3540_v39  ;;  %v4124_v25 = vpop.f32.mrb[42].mxu0  ;;  %v4126_v23 = vpop.f32.mrb[42].mxu1 }
 0x229   : > { %2527 = vst [vmem:[%s3616_s24 + $0x1e0] sm:$0xff] %v2399_v29  ;;  %v2400_v22 = vadd.f32 %v2272_v10, %v4672_v62  ;;  %v2275_v24 = vadd.f32 %v2147_v34, %v1598_v14  ;;  %v2148_v52 = vmul.f32 %v3546_v26, %v3860_v6  ;;  %v1793_v19 = vadd.f32 %v3979_v33, %v3542_v46  ;;  %v4134_v33 = vpop.f32.mrb[43].mxu0  ;;  %v4136_v41 = vpop.f32.mrb[43].mxu1 }
 0x22a   : > { %2529 = vst [vmem:[%s3616_s24 + $0x1f0] sm:$0xff] %v2401_v12  ;;  %v2402_v5 = vadd.f32 %v2274_v32, %v4672_v62  ;;  %v2277_v28 = vadd.f32 %v2149_v11, %v1791_v50  ;;  %v2150_v37 = vmul.f32 %v3556_v59, %v3860_v6  ;;  %v1602_v48 = vadd.f32 %v3985_v45, %v3529_v0  ;;  %v4156_v32 = vpop.permute.xlu1 %2039  ;;  %v4158_v50 = vpop.permute.xlu0 %2044 }
 0x22b   : > { %2528 = vst [vmem:[%s3616_s24 + $0x1e8] sm:$0xff] %v2400_v22  ;;  %v2403_v3 = vadd.f32 %v2275_v24, %v4673_v17  ;;  %v2276_v30 = vadd.f32 %v2148_v52, %v1600_v51  ;;  %v2151_v36 = vmul.f32 %v3544_v60, %v3898_v35  ;;  %v1795_v21 = vadd.f32 %v3987_v1, %v3531_v47  ;;  %v4166_v52 = vpop.f32.mrb[44].mxu0 }
 0x22c   : > { %2530 = vst [vmem:[%s3616_s24 + $0x1f8] sm:$0xff] %v2402_v5  ;;  %v2405_v6 = vadd.f32 %v2277_v28, %v4673_v17  ;;  %v2278_v53 = vadd.f32 %v2150_v37, %v1793_v19  ;;  %v2153_v7 = vmul.f32 %v3554_v55, %v3898_v35  ;;  %v1604_v29 = vadd.f32 %v3998_v49, %v3540_v39  ;;  %v4674_v49 = vld [vmem:[#allocation9_spill] sm:$0xff]  ;;  %v4176_v37 = vpop.f32.mrb[45].mxu0 }
 0x22d   : > { %2531 = vst [vmem:[%s3616_s24 + $0x200] sm:$0xff] %v2403_v3  ;;  %v2404_v45 = vadd.f32 %v2276_v30, %v4673_v17  ;;  %v2279_v62 = vadd.f32 %v2151_v36, %v1602_v48  ;;  %v2152_v10 = vmul.f32 %v3546_v26, %v3898_v35  ;;  %v1797_v1 = vadd.f32 %v4000_v13, %v3542_v46  ;;  %v4168_v13 = vpop.f32.mrb[44].mxu1 }
 0x22e   : > { %2533 = vst [vmem:[%s3616_s24 + $0x210] sm:$0xff] %v2405_v6  ;;  %v2406_v14 = vadd.f32 %v2278_v53, %v4673_v17  ;;  %v2281_v34 = vadd.f32 %v2153_v7, %v1795_v21  ;;  %v2154_v12 = vmul.f32 %v3556_v59, %v3898_v35  ;;  %v1608_v24 = vadd.f32 %v4026_v8, %v3529_v0  ;;  %v4178_v8 = vpop.f32.mrb[45].mxu1 }
 0x22f   : > { %2532 = vst [vmem:[%s3616_s24 + $0x208] sm:$0xff] %v2404_v45  ;;  %v2407_v11 = vadd.f32 %v2279_v62, %v4674_v49  ;;  %v2280_v22 = vadd.f32 %v2152_v10, %v1604_v29  ;;  %v2155_v51 = vmul.f32 %v3544_v60, %v3900_v16  ;;  %v1801_v28 = vadd.f32 %v4028_v15, %v3531_v47  ;;  %v4186_v15 = vpop.f32.mrb[46].mxu0  ;;  %v4188_v36 = vpop.f32.mrb[46].mxu1  ;;  %v4675_v62 = vld [vmem:[#allocation10_spill] sm:$0xff] }
 0x230   : > { %2534 = vst [vmem:[%s3616_s24 + $0x218] sm:$0xff] %v2406_v14  ;;  %v2409_v35 = vadd.f32 %v2281_v34, %v4674_v49  ;;  %v2282_v5 = vadd.f32 %v2154_v12, %v1797_v1  ;;  %v2157_v19 = vmul.f32 %v3554_v55, %v3900_v16  ;;  %v1610_v30 = vadd.f32 %v4046_v31, %v3540_v39  ;;  %v4196_v31 = vpop.f32.mrb[47].mxu0  ;;  %v4198_v45 = vpop.f32.mrb[47].mxu1 }
 0x231   : > { %2535 = vst [vmem:[%s3616_s24 + $0x220] sm:$0xff] %v2407_v11  ;;  %v2408_v17 = vadd.f32 %v2280_v22, %v4674_v49  ;;  %v2283_v3 = vadd.f32 %v2155_v51, %v1608_v24  ;;  %v2156_v48 = vmul.f32 %v3546_v26, %v3900_v16  ;;  %v1803_v21 = vadd.f32 %v4048_v2, %v3542_v46 }
 0x232   : > { %2537 = vst [vmem:[%s3616_s24 + $0x230] sm:$0xff] %v2409_v35  ;;  %v2410_v6 = vadd.f32 %v2282_v5, %v4674_v49  ;;  %v2285_v53 = vadd.f32 %v2157_v19, %v1801_v28  ;;  %v2158_v7 = vmul.f32 %v3556_v59, %v3900_v16  ;;  %v1612_v14 = vadd.f32 %v4056_v38, %v3529_v0  ;;  %v4224_v5 = vpop.permute.xlu1 %2049  ;;  %v2055_v28 = vpop.permute.xlu0 %2054 }
 0x233   : > { %2536 = vst [vmem:[%s3616_s24 + $0x228] sm:$0xff] %v2408_v17  ;;  %v2411_v29 = vadd.f32 %v2283_v3, %v4675_v62  ;;  %v2284_v10 = vadd.f32 %v2156_v48, %v1610_v30  ;;  %v2159_v34 = vmul.f32 %v3544_v60, %v3937_v18  ;;  %v1805_v1 = vadd.f32 %v4058_v43, %v3531_v47  ;;  %v4232_v48 = vpop.f32.mrb[48].mxu0 }
 0x234   : > { %2538 = vst [vmem:[%s3616_s24 + $0x238] sm:$0xff] %v2410_v6  ;;  %v2413_v2 = vadd.f32 %v2285_v53, %v4675_v62  ;;  %v2286_v16 = vadd.f32 %v2158_v7, %v1803_v21  ;;  %v2161_v12 = vmul.f32 %v3554_v55, %v3937_v18  ;;  %v1614_v38 = vadd.f32 %v4066_v56, %v3540_v39  ;;  %v4676_v56 = vld [vmem:[#allocation11_spill] sm:$0xff]  ;;  %v4242_v7 = vpop.f32.mrb[49].mxu0 }
 0x235   : > { %2539 = vst [vmem:[%s3616_s24 + $0x240] sm:$0xff] %v2411_v29  ;;  %v2412_v49 = vadd.f32 %v2284_v10, %v4675_v62  ;;  %v2287_v11 = vadd.f32 %v2159_v34, %v1612_v14  ;;  %v2160_v22 = vmul.f32 %v3546_v26, %v3937_v18  ;;  %v1807_v43 = vadd.f32 %v4068_v42, %v3542_v46  ;;  %v4234_v42 = vpop.f32.mrb[48].mxu1 }
 0x236   : > { %2541 = vst [vmem:[%s3616_s24 + $0x250] sm:$0xff] %v2413_v2  ;;  %v2414_v24 = vadd.f32 %v2286_v16, %v4675_v62  ;;  %v2289_v51 = vadd.f32 %v2161_v12, %v1805_v1  ;;  %v2162_v35 = vmul.f32 %v3556_v59, %v3937_v18  ;;  %v1618_v3 = vadd.f32 %v4094_v9, %v3529_v0  ;;  %v4244_v9 = vpop.f32.mrb[49].mxu1 }
 0x237   : > { %2540 = vst [vmem:[%s3616_s24 + $0x248] sm:$0xff] %v2412_v49  ;;  %v2415_v19 = vadd.f32 %v2287_v11, %v4676_v56  ;;  %v2288_v17 = vadd.f32 %v2160_v22, %v1614_v38  ;;  %v2163_v30 = vmul.f32 %v3544_v60, %v3939_v44  ;;  %v1811_v53 = vadd.f32 %v4096_v27, %v3531_v47  ;;  %v4254_v27 = vpop.f32.mrb[50].mxu0  ;;  %v4256_v34 = vpop.f32.mrb[50].mxu1  ;;  %v4677_v38 = vld [vmem:[#allocation12_spill] sm:$0xff] }
 0x238   : > { %2542 = vst [vmem:[%s3616_s24 + $0x258] sm:$0xff] %v2414_v24  ;;  %v2417_v18 = vadd.f32 %v2289_v51, %v4676_v56  ;;  %v2290_v6 = vadd.f32 %v2162_v35, %v1807_v43  ;;  %v2165_v21 = vmul.f32 %v3554_v55, %v3939_v44  ;;  %v4249_v10 = vmul.f32 %v3544_v60, %v2055_v28  ;;  %v4266_v49 = vpop.f32.mrb[51].mxu0  ;;  %v4268_v11 = vpop.f32.mrb[51].mxu1 }
 0x239   : > { %2543 = vst [vmem:[%s3616_s24 + $0x260] sm:$0xff] %v2415_v19  ;;  %v2416_v62 = vadd.f32 %v2288_v17, %v4676_v56  ;;  %v2291_v29 = vadd.f32 %v2163_v30, %v1618_v3  ;;  %v4252_v14 = vmul.f32 %v3546_v26, %v2055_v28  ;;  %v4261_v1 = vmul.f32 %v3554_v55, %v2055_v28  ;;  %v2060_v17 = vpop.permute.xlu1 %2059 }
 0x23a   : > { %2545 = vst [vmem:[%s3616_s24 + $0x270] sm:$0xff] %v2417_v18  ;;  %v2418_v2 = vadd.f32 %v2290_v6, %v4676_v56  ;;  %v2293_v16 = vadd.f32 %v2165_v21, %v1811_v53  ;;  %v4264_v12 = vmul.f32 %v3556_v59, %v2055_v28  ;;  %v1620_v24 = vadd.f32 %v4114_v20, %v3540_v39 }
 0x23b   : > { %2544 = vst [vmem:[%s3616_s24 + $0x268] sm:$0xff] %v2416_v62  ;;  %v2419_v22 = vadd.f32 %v2291_v29, %v4677_v38  ;;  %v2164_v51 = vmul.f32 %v3546_v26, %v3939_v44  ;;  %v1813_v43 = vadd.f32 %v4116_v4, %v3542_v46  ;;  %v2166_v28 = vmul.f32 %v3556_v59, %v3939_v44  ;;  %v4306_v29 = vpop.f32.mrb[52].mxu1 }
 0x23c   : > { %2546 = vst [vmem:[%s3616_s24 + $0x278] sm:$0xff] %v2418_v2  ;;  %v2421_v35 = vadd.f32 %v2293_v16, %v4677_v38  ;;  %v1622_v56 = vadd.f32 %v4124_v25, %v3529_v0  ;;  %v2167_v19 = vmul.f32 %v3544_v60, %v3967_v57  ;;  %v1815_v3 = vadd.f32 %v4126_v23, %v3531_v47  ;;  %v4678_v16 = vld [vmem:[#allocation13_spill] sm:$0xff] }
 0x23d   : > { %2547 = vst [vmem:[%s3616_s24 + $0x280] sm:$0xff] %v2419_v22  ;;  %v2292_v20 = vadd.f32 %v2164_v51, %v1620_v24  ;;  %v2169_v4 = vmul.f32 %v3554_v55, %v3967_v57  ;;  %v1624_v30 = vadd.f32 %v4134_v33, %v3540_v39  ;;  %v2294_v44 = vadd.f32 %v2166_v28, %v1813_v43  ;;  %v4304_v33 = vpop.f32.mrb[52].mxu0 }
 0x23e   : > { %2549 = vst [vmem:[%s3616_s24 + $0x290] sm:$0xff] %v2421_v35  ;;  %v2295_v18 = vadd.f32 %v2167_v19, %v1622_v56  ;;  %v2168_v25 = vmul.f32 %v3546_v26, %v3967_v57  ;;  %v1817_v6 = vadd.f32 %v4136_v41, %v3542_v46  ;;  %v2170_v23 = vmul.f32 %v3556_v59, %v3967_v57  ;;  %v4313_v51 = vpop.f32.mrb[53].mxu0  ;;  %v4315_v57 = vpop.f32.mrb[53].mxu1 }
 0x23f   : > { %v2420_v53 = vadd.f32 %v2292_v20, %v4677_v38  ;;  %v2297_v21 = vadd.f32 %v2169_v4, %v1815_v3  ;;  %v4302_v62 = vmul.f32 %v3544_v60, %v2060_v17  ;;  %v2422_v2 = vadd.f32 %v2294_v44, %v4677_v38  ;;  %v4325_v56 = vpop.f32.mrb[54].mxu0  ;;  %v4327_v19 = vpop.f32.mrb[54].mxu1 }
 0x240   : > { %v2423_v22 = vadd.f32 %v2295_v18, %v4678_v16  ;;  %v2296_v41 = vadd.f32 %v2168_v25, %v1624_v30  ;;  %v4311_v24 = vmul.f32 %v3546_v26, %v2060_v17  ;;  %v2298_v35 = vadd.f32 %v2170_v23, %v1817_v6  ;;  %v4338_v30 = vpop.f32.mrb[55].mxu0  ;;  %v4340_v44 = vpop.f32.mrb[55].mxu1 }
 0x241   : > { %2548 = vst [vmem:[%s3616_s24 + $0x288] sm:$0xff] %v2420_v53  ;;  %v2425_v43 = vadd.f32 %v2297_v21, %v4678_v16  ;;  %v4320_v28 = vmul.f32 %v3554_v55, %v2060_v17  ;;  %v4323_v38 = vmul.f32 %v3556_v59, %v2060_v17  ;;  %2550 = vst [vmem:[%s3616_s24 + $0x298] sm:$0xff] %v2422_v2 }
 0x242   : > { %2551 = vst [vmem:[%s3616_s24 + $0x2a0] sm:$0xff] %v2423_v22  ;;  %v2424_v20 = vadd.f32 %v2296_v41, %v4678_v16  ;;  %v1628_v3 = vadd.f32 %v4166_v52, %v3529_v0  ;;  %v2171_v4 = vmul.f32 %v3544_v60, %v3969_v40  ;;  %v1821_v17 = vadd.f32 %v4168_v13, %v3531_v47  ;;  %v4679_v41 = vld [vmem:[#allocation14_spill] sm:$0xff] }
 0x243   : > { %2553 = vst [vmem:[%s3616_s24 + $0x2b0] sm:$0xff] %v2425_v43  ;;  %v2426_v18 = vadd.f32 %v2298_v35, %v4678_v16  ;;  %v2173_v25 = vmul.f32 %v3554_v55, %v3969_v40  ;;  %v1630_v6 = vadd.f32 %v4176_v37, %v3540_v39  ;;  %v2172_v52 = vmul.f32 %v3546_v26, %v3969_v40 }
 0x244   : > { %2552 = vst [vmem:[%s3616_s24 + $0x2a8] sm:$0xff] %v2424_v20  ;;  %v2299_v53 = vadd.f32 %v2171_v4, %v1628_v3  ;;  %v1823_v13 = vadd.f32 %v4178_v8, %v3542_v46  ;;  %v2174_v21 = vmul.f32 %v3556_v59, %v3969_v40  ;;  %v1632_v23 = vadd.f32 %v4186_v15, %v3529_v0 }
 0x245   : > { %2554 = vst [vmem:[%s3616_s24 + $0x2b8] sm:$0xff] %v2426_v18  ;;  %v2301_v2 = vadd.f32 %v2173_v25, %v1821_v17  ;;  %v2300_v16 = vadd.f32 %v2172_v52, %v1630_v6  ;;  %v2175_v37 = vmul.f32 %v3544_v60, %v4035_v58  ;;  %v1825_v22 = vadd.f32 %v4188_v36, %v3531_v47  ;;  %v4371_v36 = vpop.f32.mrb[56].mxu0  ;;  %v4379_v6 = vpop.f32.mrb[56].mxu1 }
 0x246   : > { %v2427_v43 = vadd.f32 %v2299_v53, %v4679_v41  ;;  %v2302_v8 = vadd.f32 %v2174_v21, %v1823_v13  ;;  %v2177_v40 = vmul.f32 %v3554_v55, %v4035_v58  ;;  %v1634_v15 = vadd.f32 %v4196_v31, %v3540_v39  ;;  %v4381_v52 = vpop.f32.mrb[57].mxu0  ;;  %v4680_v53 = vld [vmem:[#allocation15_spill] sm:$0xff] }
 0x247   : > { %v2429_v35 = vadd.f32 %v2301_v2, %v4679_v41  ;;  %v2428_v20 = vadd.f32 %v2300_v16, %v4679_v41  ;;  %v2303_v3 = vadd.f32 %v2175_v37, %v1632_v23  ;;  %v2176_v4 = vmul.f32 %v3546_v26, %v4035_v58 }
 0x248   : > { %2555 = vst [vmem:[%s3616_s24 + $0x2c0] sm:$0xff] %v2427_v43  ;;  %v2430_v17 = vadd.f32 %v2302_v8, %v4679_v41  ;;  %v2305_v18 = vadd.f32 %v2177_v40, %v1825_v22  ;;  %v1827_v25 = vadd.f32 %v4198_v45, %v3542_v46  ;;  %v2178_v31 = vmul.f32 %v3556_v59, %v4035_v58  ;;  %v4390_v45 = vpop.f32.mrb[57].mxu1  ;;  %v4392_v58 = vpop.f32.mrb[58].mxu0 }
 0x249   : > { %2557 = vst [vmem:[%s3616_s24 + $0x2d0] sm:$0xff] %v2429_v35  ;;  %2556 = vst [vmem:[%s3616_s24 + $0x2c8] sm:$0xff] %v2428_v20  ;;  %v2431_v13 = vadd.f32 %v2303_v3, %v4680_v53  ;;  %v2304_v21 = vadd.f32 %v2176_v4, %v1634_v15  ;;  %v1638_v23 = vadd.f32 %v4232_v48, %v3529_v0  ;;  %v4400_v48 = vpop.f32.mrb[58].mxu1  ;;  %v4402_v43 = vpop.f32.mrb[59].mxu0 }
 0x24a   : > { %v2179_v2 = vmul.f32 %v3544_v60, %v4037_v61  ;;  %2558 = vst [vmem:[%s3616_s24 + $0x2d8] sm:$0xff] %v2430_v17  ;;  %v2433_v16 = vadd.f32 %v2305_v18, %v4680_v53  ;;  %v2306_v37 = vadd.f32 %v2178_v31, %v1827_v25  ;;  %v1831_v22 = vadd.f32 %v4234_v42, %v3531_v47  ;;  %v4410_v20 = vpop.f32.mrb[59].mxu1  ;;  %v4681_v18 = vld [vmem:[#allocation16_spill] sm:$0xff] }
 0x24b   : > { %v2181_v41 = vmul.f32 %v3554_v55, %v4037_v61  ;;  %2559 = vst [vmem:[%s3616_s24 + $0x2e0] sm:$0xff] %v2431_v13  ;;  %v2432_v8 = vadd.f32 %v2304_v21, %v4680_v53  ;;  %v1640_v15 = vadd.f32 %v4242_v7, %v3540_v39  ;;  %v2180_v35 = vmul.f32 %v3546_v26, %v4037_v61 }
 0x24c   : > { %v2307_v40 = vadd.f32 %v2179_v2, %v1638_v23  ;;  %2561 = vst [vmem:[%s3616_s24 + $0x2f0] sm:$0xff] %v2433_v16  ;;  %v2434_v42 = vadd.f32 %v2306_v37, %v4680_v53  ;;  %v1833_v4 = vadd.f32 %v4244_v9, %v3542_v46  ;;  %v2182_v17 = vmul.f32 %v3556_v59, %v4037_v61  ;;  %v4436_v37 = vpop.f32.mrb[60].mxu0 }
 0x24d   : > { %v2309_v3 = vadd.f32 %v2181_v41, %v1831_v22  ;;  %2560 = vst [vmem:[%s3616_s24 + $0x2e8] sm:$0xff] %v2432_v8  ;;  %v2308_v25 = vadd.f32 %v2180_v35, %v1640_v15  ;;  %v1642_v31 = vadd.f32 %v4254_v27, %v3529_v0  ;;  %v2183_v13 = vmul.f32 %v3544_v60, %v4104_v63  ;;  %v4682_v15 = vld [vmem:[#allocation17_spill] sm:$0xff] }
 0x24e   : > { %v2435_v7 = vadd.f32 %v2307_v40, %v4681_v18  ;;  %2562 = vst [vmem:[%s3616_s24 + $0x2f8] sm:$0xff] %v2434_v42  ;;  %v2310_v21 = vadd.f32 %v2182_v17, %v1833_v4  ;;  %v1835_v9 = vadd.f32 %v4256_v34, %v3531_v47  ;;  %v2185_v61 = vmul.f32 %v3554_v55, %v4104_v63  ;;  %v4444_v40 = vpop.f32.mrb[60].mxu1 }
 0x24f   : > { %v2437_v53 = vadd.f32 %v2309_v3, %v4681_v18  ;;  %v2436_v23 = vadd.f32 %v2308_v25, %v4681_v18  ;;  %v2311_v2 = vadd.f32 %v2183_v13, %v1642_v31  ;;  %v1644_v27 = vadd.f32 %v4266_v49, %v3540_v39  ;;  %v4446_v49 = vpop.f32.mrb[61].mxu0 }
 0x250   : > { %2563 = vst [vmem:[%s3616_s24 + $0x300] sm:$0xff] %v2435_v7  ;;  %v2184_v16 = vmul.f32 %v3546_v26, %v4104_v63  ;;  %v2438_v22 = vadd.f32 %v2310_v21, %v4681_v18  ;;  %v2313_v34 = vadd.f32 %v2185_v61, %v1835_v9  ;;  %v1837_v41 = vadd.f32 %v4268_v11, %v3542_v46  ;;  %v4454_v11 = vpop.f32.mrb[61].mxu1  ;;  %v4456_v17 = vpop.f32.mrb[62].mxu0 }
 0x251   : > { %2565 = vst [vmem:[%s3616_s24 + $0x310] sm:$0xff] %v2437_v53  ;;  %v2186_v8 = vmul.f32 %v3556_v59, %v4104_v63  ;;  %2564 = vst [vmem:[%s3616_s24 + $0x308] sm:$0xff] %v2436_v23  ;;  %v2439_v35 = vadd.f32 %v2311_v2, %v4682_v15  ;;  %v1648_v3 = vadd.f32 %v4304_v33, %v3529_v0  ;;  %v4464_v33 = vpop.f32.mrb[62].mxu1  ;;  %v4466_v31 = vpop.f32.mrb[63].mxu0 }
 0x252   : > { %v2312_v42 = vadd.f32 %v2184_v16, %v1644_v27  ;;  %v2187_v4 = vmul.f32 %v3544_v60, %v4106_v54  ;;  %2566 = vst [vmem:[%s3616_s24 + $0x318] sm:$0xff] %v2438_v22  ;;  %v2441_v63 = vadd.f32 %v2313_v34, %v4682_v15  ;;  %v1841_v7 = vadd.f32 %v4306_v29, %v3531_v47  ;;  %v4474_v61 = vpop.f32.mrb[63].mxu1  ;;  %v4683_v16 = vld [vmem:[#allocation18_spill] sm:$0xff] }
 0x253   : > { %v2314_v18 = vadd.f32 %v2186_v8, %v1837_v41  ;;  %v2189_v25 = vmul.f32 %v3554_v55, %v4106_v54  ;;  %2567 = vst [vmem:[%s3616_s24 + $0x320] sm:$0xff] %v2439_v35  ;;  %v1650_v21 = vadd.f32 %v4313_v51, %v3540_v39  ;;  %v2188_v9 = vmul.f32 %v3546_v26, %v4106_v54 }
 0x254   : > { %v2440_v13 = vadd.f32 %v2312_v42, %v4682_v15  ;;  %v2315_v53 = vadd.f32 %v2187_v4, %v1648_v3  ;;  %2569 = vst [vmem:[%s3616_s24 + $0x330] sm:$0xff] %v2441_v63  ;;  %v1843_v2 = vadd.f32 %v4315_v57, %v3542_v46  ;;  %v2190_v27 = vmul.f32 %v3556_v59, %v4106_v54 }
 0x255   : > { %v2442_v29 = vadd.f32 %v2314_v18, %v4682_v15  ;;  %v2317_v23 = vadd.f32 %v2189_v25, %v1841_v7  ;;  %v2316_v22 = vadd.f32 %v2188_v9, %v1650_v21  ;;  %v1652_v34 = vadd.f32 %v4325_v56, %v3529_v0  ;;  %v4684_v7 = vld [vmem:[#allocation19_spill] sm:$0xff] }
 0x256   : > { %2568 = vst [vmem:[%s3616_s24 + $0x328] sm:$0xff] %v2440_v13  ;;  %v2443_v51 = vadd.f32 %v2315_v53, %v4683_v16  ;;  %v2191_v41 = vmul.f32 %v3544_v60, %v4156_v32  ;;  %v2318_v15 = vadd.f32 %v2190_v27, %v1843_v2  ;;  %v1845_v57 = vadd.f32 %v4327_v19, %v3531_v47 }
 0x257   : > { %2570 = vst [vmem:[%s3616_s24 + $0x338] sm:$0xff] %v2442_v29  ;;  %v2445_v8 = vadd.f32 %v2317_v23, %v4683_v16  ;;  %v2193_v54 = vmul.f32 %v3554_v55, %v4156_v32  ;;  %v2444_v35 = vadd.f32 %v2316_v22, %v4683_v16  ;;  %v1654_v56 = vadd.f32 %v4338_v30, %v3540_v39  ;;  %v4685_v22 = vld [vmem:[#allocation20_spill] sm:$0xff] }
 0x258   : > { %2571 = vst [vmem:[%s3616_s24 + $0x340] sm:$0xff] %v2443_v51  ;;  %v2319_v42 = vadd.f32 %v2191_v41, %v1652_v34  ;;  %v2192_v3 = vmul.f32 %v3546_v26, %v4156_v32  ;;  %v2446_v4 = vadd.f32 %v2318_v15, %v4683_v16  ;;  %v1847_v19 = vadd.f32 %v4340_v44, %v3542_v46 }
 0x259   : > { %2573 = vst [vmem:[%s3616_s24 + $0x350] sm:$0xff] %v2445_v8  ;;  %v2321_v63 = vadd.f32 %v2193_v54, %v1845_v57  ;;  %v2194_v18 = vmul.f32 %v3556_v59, %v4156_v32  ;;  %2572 = vst [vmem:[%s3616_s24 + $0x348] sm:$0xff] %v2444_v35  ;;  %v1658_v30 = vadd.f32 %v4371_v36, %v3529_v0 }
 0x25a   : > { %v2447_v25 = vadd.f32 %v2319_v42, %v4684_v7  ;;  %v2320_v13 = vadd.f32 %v2192_v3, %v1654_v56  ;;  %v2195_v53 = vmul.f32 %v3544_v60, %v4158_v50  ;;  %2574 = vst [vmem:[%s3616_s24 + $0x358] sm:$0xff] %v2446_v4  ;;  %v1851_v44 = vadd.f32 %v4379_v6, %v3531_v47  ;;  %v4686_v3 = vld [vmem:[#allocation21_spill] sm:$0xff] }
 0x25b   : > { %v2449_v21 = vadd.f32 %v2321_v63, %v4684_v7  ;;  %v2322_v9 = vadd.f32 %v2194_v18, %v1847_v19  ;;  %v2197_v32 = vmul.f32 %v3554_v55, %v4158_v50  ;;  %v1660_v36 = vadd.f32 %v4381_v52, %v3540_v39 }
 0x25c   : > { %2575 = vst [vmem:[%s3616_s24 + $0x360] sm:$0xff] %v2447_v25  ;;  %v2448_v29 = vadd.f32 %v2320_v13, %v4684_v7  ;;  %v2323_v23 = vadd.f32 %v2195_v53, %v1658_v30  ;;  %v2196_v2 = vmul.f32 %v3546_v26, %v4158_v50  ;;  %v1853_v6 = vadd.f32 %v4390_v45, %v3542_v46  ;;  %v4688_v53 = vld [vmem:[#allocation23_spill] sm:$0xff] }
 0x25d   : > { %2577 = vst [vmem:[%s3616_s24 + $0x370] sm:$0xff] %v2449_v21  ;;  %v2450_v27 = vadd.f32 %v2322_v9, %v4684_v7  ;;  %v2325_v16 = vadd.f32 %v2197_v32, %v1851_v44  ;;  %v2198_v51 = vmul.f32 %v3556_v59, %v4158_v50  ;;  %v1662_v52 = vadd.f32 %v4392_v58, %v3529_v0 }
 0x25e   : > { %2576 = vst [vmem:[%s3616_s24 + $0x368] sm:$0xff] %v2448_v29  ;;  %v2451_v34 = vadd.f32 %v2323_v23, %v4685_v22  ;;  %v2324_v41 = vadd.f32 %v2196_v2, %v1660_v36  ;;  %v2199_v8 = vmul.f32 %v3544_v60, %v4224_v5  ;;  %v1855_v45 = vadd.f32 %v4400_v48, %v3531_v47 }
 0x25f   : > { %2578 = vst [vmem:[%s3616_s24 + $0x378] sm:$0xff] %v2450_v27  ;;  %v2453_v15 = vadd.f32 %v2325_v16, %v4685_v22  ;;  %v2326_v57 = vadd.f32 %v2198_v51, %v1853_v6  ;;  %v2201_v50 = vmul.f32 %v3554_v55, %v4224_v5  ;;  %v1664_v58 = vadd.f32 %v4402_v43, %v3540_v39 }
 0x260   : > { %2579 = vst [vmem:[%s3616_s24 + $0x380] sm:$0xff] %v2451_v34  ;;  %v2452_v54 = vadd.f32 %v2324_v41, %v4685_v22  ;;  %v2327_v35 = vadd.f32 %v2199_v8, %v1662_v52  ;;  %v2200_v60 = vmul.f32 %v3546_v26, %v4224_v5  ;;  %v1857_v48 = vadd.f32 %v4410_v20, %v3542_v46 }
 0x261   : > { %2581 = vst [vmem:[%s3616_s24 + $0x390] sm:$0xff] %v2453_v15  ;;  %v2454_v42 = vadd.f32 %v2326_v57, %v4685_v22  ;;  %v2329_v56 = vadd.f32 %v2201_v50, %v1855_v45  ;;  %v2202_v55 = vmul.f32 %v3556_v59, %v4224_v5  ;;  %v1668_v43 = vadd.f32 %v4436_v37, %v3529_v0 }
 0x262   : > { %2580 = vst [vmem:[%s3616_s24 + $0x388] sm:$0xff] %v2452_v54  ;;  %v2455_v4 = vadd.f32 %v2327_v35, %v4686_v3  ;;  %v2328_v63 = vadd.f32 %v2200_v60, %v1664_v58  ;;  %v1861_v26 = vadd.f32 %v4444_v40, %v3531_v47  ;;  %v1670_v20 = vadd.f32 %v4446_v49, %v3540_v39 }
 0x263   : > { %2582 = vst [vmem:[%s3616_s24 + $0x398] sm:$0xff] %v2454_v42  ;;  %v2457_v19 = vadd.f32 %v2329_v56, %v4686_v3  ;;  %v2330_v18 = vadd.f32 %v2202_v55, %v1857_v48  ;;  %v1863_v59 = vadd.f32 %v4454_v11, %v3542_v46  ;;  %v2331_v37 = vadd.f32 %v4249_v10, %v1668_v43  ;;  %v4687_v10 = vld [vmem:[#allocation22_spill] sm:$0xff] }
 0x264   : > { %2583 = vst [vmem:[%s3616_s24 + $0x3a0] sm:$0xff] %v2455_v4  ;;  %v2456_v5 = vadd.f32 %v2328_v63, %v4686_v3  ;;  %v2333_v7 = vadd.f32 %v4261_v1, %v1861_v26  ;;  %v1672_v40 = vadd.f32 %v4456_v17, %v3529_v0  ;;  %v2332_v49 = vadd.f32 %v4252_v14, %v1670_v20 }
 0x265   : > { %2585 = vst [vmem:[%s3616_s24 + $0x3b0] sm:$0xff] %v2457_v19  ;;  %v2458_v25 = vadd.f32 %v2330_v18, %v4686_v3  ;;  %v2334_v11 = vadd.f32 %v4264_v12, %v1863_v59  ;;  %v1865_v13 = vadd.f32 %v4464_v33, %v3531_v47  ;;  %v2459_v1 = vadd.f32 %v2331_v37, %v4687_v10 }
 0x266   : > { %2584 = vst [vmem:[%s3616_s24 + $0x3a8] sm:$0xff] %v2456_v5  ;;  %v2461_v30 = vadd.f32 %v2333_v7, %v4687_v10  ;;  %v2335_v0 = vadd.f32 %v4302_v62, %v1672_v40  ;;  %v1674_v17 = vadd.f32 %v4466_v31, %v3540_v39  ;;  %v2460_v14 = vadd.f32 %v2332_v49, %v4687_v10 }
 0x267   : > { %2586 = vst [vmem:[%s3616_s24 + $0x3b8] sm:$0xff] %v2458_v25  ;;  %v2462_v12 = vadd.f32 %v2334_v11, %v4687_v10  ;;  %v2337_v47 = vadd.f32 %v4320_v28, %v1865_v13  ;;  %v1867_v33 = vadd.f32 %v4474_v61, %v3542_v46  ;;  %2587 = vst [vmem:[%s3616_s24 + $0x3c0] sm:$0xff] %v2459_v1 }
 0x268   : > { %2589 = vst [vmem:[%s3616_s24 + $0x3d0] sm:$0xff] %v2461_v30  ;;  %v2463_v62 = vadd.f32 %v2335_v0, %v4688_v53  ;;  %v2336_v21 = vadd.f32 %v4311_v24, %v1674_v17  ;;  %2588 = vst [vmem:[%s3616_s24 + $0x3c8] sm:$0xff] %v2460_v14 }
 0x269   : > { %2590 = vst [vmem:[%s3616_s24 + $0x3d8] sm:$0xff] %v2462_v12  ;;  %v2465_v39 = vadd.f32 %v2337_v47, %v4688_v53  ;;  %v2338_v31 = vadd.f32 %v4323_v38, %v1867_v33 }
 0x26a   : > { %2591 = vst [vmem:[%s3616_s24 + $0x3e0] sm:$0xff] %v2463_v62  ;;  %v2464_v9 = vadd.f32 %v2336_v21, %v4688_v53 }
 0x26b   : > { %2593 = vst [vmem:[%s3616_s24 + $0x3f0] sm:$0xff] %v2465_v39  ;;  %v2466_v28 = vadd.f32 %v2338_v31, %v4688_v53 }
 0x26c   : > { %2592 = vst [vmem:[%s3616_s24 + $0x3e8] sm:$0xff] %v2464_v9 }
 0x26d   : > { %2594 = vst [vmem:[%s3616_s24 + $0x3f8] sm:$0xff] %v2466_v28 }
 0x26e PF: > { %s20_s13 = sadd.s32 1, %s2808_s13  }
 0x26f   : > { %p17_p4 = scmp.ge.s32.totalorder %s20_s13, 5  }
 0x271   :  { %19 = sbr.rel (!%p17_p4) target bundleno = 1 (0x1), region = 99 }

</bundles_post_ra>
